<compile_context>
chip_gen: v6e
topology: v6e:2x2x1
jax: 0.10.0
libtpu: 0.0.40
codegen_flags: <defaults>
</compile_context>

<pallas_src>
import math

import numpy as np
import jax
import jax.numpy as jnp
from jax.experimental import pallas as pl
from jax.experimental.pallas import tpu as pltpu


def _round_up(n, m):
    return ((n + m - 1) // m) * m


# ----------------------------------------------------------------------------
# Kernel: 4 dense layers (convs are pre-lowered to dense mats in the wrapper).
# bf16 operands, f32 MXU accumulation, f32 bias add + ReLU.
# ----------------------------------------------------------------------------
def mlp_kernel(x_ref, w1_ref, b1_ref, w2_ref, b2_ref, w3_ref, b3_ref,
               wf_ref, bf_ref, out_ref):
    def dense_relu(h, w_ref, b_ref):
        y = jnp.dot(h, w_ref[...], preferred_element_type=jnp.float32)
        return jnp.maximum(y + b_ref[...], 0.0)

    h = x_ref[...]                                            # (bt, d0p) bf16
    h = dense_relu(h, w1_ref, b1_ref).astype(jnp.bfloat16)    # (bt, n1)
    h = dense_relu(h, w2_ref, b2_ref).astype(jnp.bfloat16)    # (bt, n2)
    h = dense_relu(h, w3_ref, b3_ref).astype(jnp.bfloat16)    # (bt, n3)
    out_ref[...] = dense_relu(h, wf_ref, bf_ref)              # (bt, 128) f32


# ----------------------------------------------------------------------------
# Wrapper helpers.
# ----------------------------------------------------------------------------
def conv_as_dense(w, b, H, W):
    """Exact lowering of a valid stride-1 conv to a dense matmul.

    w: (KH, KW, Cin, Cout), b: (Cout,), input spatial (H, W), channels-last.
    Returns (W_eff, b_eff): W_eff (H*W*Cin, Ho*Wo*Cout), b_eff (1, Ho*Wo*Cout)
    so conv(x)[ho, wo, co] == (x.reshape(-1) @ W_eff + b_eff)[(ho*Wo+wo)*Cout+co].
    Construction is 0/1 masking only -> bit-exact w.r.t. the conv weights.
    """
    KH, KW, Cin, Cout = w.shape
    Ho, Wo = H - KH + 1, W - KW + 1
    sel = np.zeros((KH, KW, H, W, Ho, Wo), np.float32)
    for di in range(KH):
        for dj in range(KW):
            for ho in range(Ho):
                for wo in range(Wo):
                    sel[di, dj, ho + di, wo + dj, ho, wo] = 1.0
    sel = jnp.asarray(sel)
    # At most one nonzero term per (h, w, ho, wo) -> exact.
    w_eff = (sel[..., None, None] *
             w[:, :, None, None, None, None, :, :]).sum(axis=(0, 1))
    # (H, W, Ho, Wo, Cin, Cout) -> rows ordered (h, w, cin), cols (ho, wo, cout)
    w_eff = w_eff.transpose(0, 1, 4, 2, 3, 5).reshape(H * W * Cin, Ho * Wo * Cout)
    b_eff = jnp.broadcast_to(b[None, :], (Ho * Wo, Cout)).reshape(1, Ho * Wo * Cout)
    return w_eff, b_eff


def _choose_tiling(B, *, max_block_b=1024, min_tiles=2):
    """Pick (batch_tile, padded_batch): tiles are multiples of 8 rows, the grid
    has >= min_tiles steps when B allows it (keeps both v7x cores busy), and no
    tile exceeds max_block_b rows (VMEM budget)."""
    Bp8 = _round_up(B, 8)
    nt = max(min_tiles, pl.cdiv(Bp8, max_block_b))
    nt = max(1, min(nt, Bp8 // 8))          # never below 8 rows per tile
    bt = _round_up(pl.cdiv(Bp8, nt), 8)
    nt = pl.cdiv(Bp8, bt)
    return bt, bt * nt


def baseline_cnn_forward(x, params, *, max_block_b=1024):
    w1, b1, w2, b2, w3, b3, wf, bf = params
    B, S, NC = x.shape
    H1, W1 = S - 2, NC - 2
    H2, W2 = S - 4, NC - 4
    H3, W3 = S - 6, NC - 6
    assert H3 >= 1 and W3 >= 1
    # The PyTorch module's fc expects (NC - 6) * 16 inputs, i.e. seq_size == 7.
    assert H3 * W3 * 16 == wf.shape[1], "fc in_features mismatch (needs seq_size == 7)"

    # --- exact lowering of the 3 convs to dense layers; fc permuted to match
    #     the kernel's (h, w, cout) feature order (torch flattens NCHW). -------
    W1e, B1e = conv_as_dense(w1, b1, S, NC)
    W2e, B2e = conv_as_dense(w2, b2, H1, W1)
    W3e, B3e = conv_as_dense(w3, b3, H2, W2)
    Wfe = jnp.transpose(wf.reshape(NC, 16, H3, W3), (2, 3, 1, 0)).reshape(H3 * W3 * 16, NC)
    Bfe = bf.reshape(1, NC)

    # --- lane alignment: input features padded to /128, output padded to 128
    #     lanes (zero weights/bias -> exact; sliced off below). ----------------
    d0 = S * NC
    d0p = _round_up(d0, 128)
    if d0p != d0:
        W1e = jnp.pad(W1e, ((0, d0p - d0), (0, 0)))
    nop = _round_up(NC, 128)
    if nop != NC:
        Wfe = jnp.pad(Wfe, ((0, 0), (0, nop - NC)))
        Bfe = jnp.pad(Bfe, ((0, 0), (0, nop - NC)))

    # bf16 weights -> single-pass MXU matmuls; biases stay f32.
    weights = (W1e.astype(jnp.bfloat16), B1e,
               W2e.astype(jnp.bfloat16), B2e,
               W3e.astype(jnp.bfloat16), B3e,
               Wfe.astype(jnp.bfloat16), Bfe)

    # --- batch tiling ---------------------------------------------------------
    bt, Bp = _choose_tiling(B, max_block_b=max_block_b)
    x2 = x.reshape(B, d0).astype(jnp.bfloat16)          # (h, w, cin=1) flatten
    x2 = jnp.pad(x2, ((0, Bp - B), (0, d0p - d0)))

    layer_dims = [d0p, W1e.shape[1], W2e.shape[1], W3e.shape[1], nop]
    flops = 2 * Bp * sum(a * b for a, b in zip(layer_dims[:-1], layer_dims[1:]))
    bytes_accessed = (int(x2.size) * 2
                      + sum(int(w.size) * int(w.dtype.itemsize) for w in weights)
                      + 4 * Bp * nop)

    full = lambda a: pl.BlockSpec(a.shape, lambda i: (0,) * a.ndim)
    out = pl.pallas_call(
        mlp_kernel,
        out_shape=jax.ShapeDtypeStruct((Bp, nop), jnp.float32),
        grid=(Bp // bt,),
        in_specs=[pl.BlockSpec((bt, d0p), lambda i: (i, 0))]
                 + [full(w) for w in weights],
        out_specs=pl.BlockSpec((bt, nop), lambda i: (i, 0)),
        compiler_params=pltpu.CompilerParams(
            dimension_semantics=("parallel",),
            vmem_limit_bytes=32 * 1024 * 1024),
        cost_estimate=pl.CostEstimate(
            flops=int(flops), transcendentals=0, bytes_accessed=int(bytes_accessed)),
    )(x2, *weights)
    return out[:B, :NC]


# ----------------------------------------------------------------------------
# Synthetic params + pure-JAX reference (conv path, NCHW) for verification.
# ----------------------------------------------------------------------------
def init_params(key, embed_dim, seq_size):
    keys = jax.random.split(key, 8)

    def conv_init(kw, kb, cin, cout, kh, kwid):
        bound = 1.0 / math.sqrt(cin * kh * kwid)
        w = jax.random.uniform(kw, (kh, kwid, cin, cout), jnp.float32, -bound, bound)
        b = jax.random.uniform(kb, (cout,), jnp.float32, -bound, bound)
        return w, b

    w1, b1 = conv_init(keys[0], keys[1], 1, 4, 3, 3)
    w2, b2 = conv_init(keys[2], keys[3], 4, 8, 3, 3)
    w3, b3 = conv_init(keys[4], keys[5], 8, 16, 3, 3)
    nx = embed_dim - 6
    bound = 1.0 / math.sqrt(nx * 16)
    wf = jax.random.uniform(keys[6], (embed_dim, nx * 16), jnp.float32, -bound, bound)
    bf = jax.random.uniform(keys[7], (embed_dim,), jnp.float32, -bound, bound)
    return w1, b1, w2, b2, w3, b3, wf, bf


def reference(x, params):
    w1, b1, w2, b2, w3, b3, wf, bf = params
    B, S, NC = x.shape
    h = x.reshape(B, 1, S, NC)

    def conv(h, w, b):
        out = jax.lax.conv_general_dilated(
            h, w, (1, 1), "VALID",
            dimension_numbers=("NCHW", "HWIO", "NCHW"),
            precision=jax.lax.Precision.HIGHEST)
        return jnp.maximum(out + b[None, :, None, None], 0.0)

    h = conv(h, w1, b1)
    h = conv(h, w2, b2)
    h = conv(h, w3, b3)
    flat = h.reshape(B, -1)                      # NCHW flatten == torch order
    y = jnp.dot(flat, wf.T, precision=jax.lax.Precision.HIGHEST)
    return jnp.maximum(y + bf[None, :], 0.0)


if __name__ == "__main__":
    # seq_size must be 7 so the flattened conv3 output matches fc's expected
    # (nc - 6) * 16 input width (as implied by the PyTorch module).
    embed_dim, seq_size, batch = 16, 7, 300     # -> 2 batch tiles of 152 rows

    key = jax.random.PRNGKey(0)
    kx, kp = jax.random.split(key)
    x = jax.random.normal(kx, (batch, seq_size, embed_dim), jnp.float32)
    params = init_params(kp, embed_dim, seq_size)

    out = jax.block_until_ready(baseline_cnn_forward(x, params))
    ref = reference(x, params)
    assert out.shape == (batch, embed_dim)
    err = float(jnp.max(jnp.abs(out - ref)))
    # Tolerance covers bf16 operands (single-pass MXU, f32 accumulation) vs.
    # the f32 HIGHEST-precision conv reference.
    assert jnp.allclose(out, ref, atol=2e-2, rtol=2e-2), f"max err {err}"
    print("KERNEL_OK")
</pallas_src>

<mosaic_0001>
module attributes {stable_mosaic.version = 11 : i64} {
  func.func @mlp_kernel(%arg0: i32, %arg1: memref<152x128xbf16, #tpu.memory_space<vmem>>, %arg2: memref<128x280xbf16, #tpu.memory_space<vmem>>, %arg3: memref<1x280xf32, #tpu.memory_space<vmem>>, %arg4: memref<280x288xbf16, #tpu.memory_space<vmem>>, %arg5: memref<1x288xf32, #tpu.memory_space<vmem>>, %arg6: memref<288x160xbf16, #tpu.memory_space<vmem>>, %arg7: memref<1x160xf32, #tpu.memory_space<vmem>>, %arg8: memref<160x128xbf16, #tpu.memory_space<vmem>>, %arg9: memref<1x128xf32, #tpu.memory_space<vmem>>, %arg10: memref<152x128xf32, #tpu.memory_space<vmem>>) attributes {dimension_semantics = [#tpu.dimension_semantics<parallel>], iteration_bounds = array<i64: 2>, scalar_prefetch = 0 : i64, scratch_operands = 0 : i64, tpu.core_type = #tpu.core_type<tc>, window_params = [{transform_indices = @transform_0, window_bounds = array<i64: 152, 128>}, {pipeline_mode = #tpu.pipeline_mode<synchronous>, transform_indices = @transform_1, window_bounds = array<i64: 128, 280>}, {pipeline_mode = #tpu.pipeline_mode<synchronous>, transform_indices = @transform_2, window_bounds = array<i64: 1, 280>}, {pipeline_mode = #tpu.pipeline_mode<synchronous>, transform_indices = @transform_3, window_bounds = array<i64: 280, 288>}, {pipeline_mode = #tpu.pipeline_mode<synchronous>, transform_indices = @transform_4, window_bounds = array<i64: 1, 288>}, {pipeline_mode = #tpu.pipeline_mode<synchronous>, transform_indices = @transform_5, window_bounds = array<i64: 288, 160>}, {pipeline_mode = #tpu.pipeline_mode<synchronous>, transform_indices = @transform_6, window_bounds = array<i64: 1, 160>}, {pipeline_mode = #tpu.pipeline_mode<synchronous>, transform_indices = @transform_7, window_bounds = array<i64: 160, 128>}, {pipeline_mode = #tpu.pipeline_mode<synchronous>, transform_indices = @transform_8, window_bounds = array<i64: 1, 128>}, {transform_indices = @transform_9, window_bounds = array<i64: 152, 128>}]} {
    %c0 = arith.constant 0 : index
    %c0_0 = arith.constant 0 : index
    %0 = vector.load %arg1[%c0, %c0_0] : memref<152x128xbf16, #tpu.memory_space<vmem>>, vector<152x128xbf16>
    %c0_1 = arith.constant 0 : index
    %c0_2 = arith.constant 0 : index
    %1 = vector.load %arg2[%c0_1, %c0_2] : memref<128x280xbf16, #tpu.memory_space<vmem>>, vector<128x280xbf16>
    %cst = arith.constant dense<0.000000e+00> : vector<152x280xf32>
    %2 = tpu.matmul %0, %1, %cst {dimension_numbers = #tpu.dot_dimension_numbers<[1], [0], [0], [1], [0, 0, 1, 1], [], []>} : vector<152x128xbf16>, vector<128x280xbf16>, vector<152x280xf32> -> vector<152x280xf32>
    %c0_3 = arith.constant 0 : index
    %c0_4 = arith.constant 0 : index
    %3 = vector.load %arg3[%c0_3, %c0_4] : memref<1x280xf32, #tpu.memory_space<vmem>>, vector<1x280xf32>
    %4 = vector.broadcast %3 : vector<1x280xf32> to vector<152x280xf32>
    %5 = arith.addf %2, %4 : vector<152x280xf32>
    %cst_5 = arith.constant 0.000000e+00 : f32
    %6 = vector.broadcast %cst_5 : f32 to vector<152x280xf32>
    %7 = arith.maximumf %5, %6 : vector<152x280xf32>
    %8 = arith.truncf %7 : vector<152x280xf32> to vector<152x280xbf16>
    %c0_6 = arith.constant 0 : index
    %c0_7 = arith.constant 0 : index
    %9 = vector.load %arg4[%c0_6, %c0_7] : memref<280x288xbf16, #tpu.memory_space<vmem>>, vector<280x288xbf16>
    %cst_8 = arith.constant dense<0.000000e+00> : vector<152x288xf32>
    %10 = tpu.matmul %8, %9, %cst_8 {dimension_numbers = #tpu.dot_dimension_numbers<[1], [0], [0], [1], [0, 0, 1, 1], [], []>} : vector<152x280xbf16>, vector<280x288xbf16>, vector<152x288xf32> -> vector<152x288xf32>
    %c0_9 = arith.constant 0 : index
    %c0_10 = arith.constant 0 : index
    %11 = vector.load %arg5[%c0_9, %c0_10] : memref<1x288xf32, #tpu.memory_space<vmem>>, vector<1x288xf32>
    %12 = vector.broadcast %11 : vector<1x288xf32> to vector<152x288xf32>
    %13 = arith.addf %10, %12 : vector<152x288xf32>
    %cst_11 = arith.constant 0.000000e+00 : f32
    %14 = vector.broadcast %cst_11 : f32 to vector<152x288xf32>
    %15 = arith.maximumf %13, %14 : vector<152x288xf32>
    %16 = arith.truncf %15 : vector<152x288xf32> to vector<152x288xbf16>
    %c0_12 = arith.constant 0 : index
    %c0_13 = arith.constant 0 : index
    %17 = vector.load %arg6[%c0_12, %c0_13] : memref<288x160xbf16, #tpu.memory_space<vmem>>, vector<288x160xbf16>
    %cst_14 = arith.constant dense<0.000000e+00> : vector<152x160xf32>
    %18 = tpu.matmul %16, %17, %cst_14 {dimension_numbers = #tpu.dot_dimension_numbers<[1], [0], [0], [1], [0, 0, 1, 1], [], []>} : vector<152x288xbf16>, vector<288x160xbf16>, vector<152x160xf32> -> vector<152x160xf32>
    %c0_15 = arith.constant 0 : index
    %c0_16 = arith.constant 0 : index
    %19 = vector.load %arg7[%c0_15, %c0_16] : memref<1x160xf32, #tpu.memory_space<vmem>>, vector<1x160xf32>
    %20 = vector.broadcast %19 : vector<1x160xf32> to vector<152x160xf32>
    %21 = arith.addf %18, %20 : vector<152x160xf32>
    %cst_17 = arith.constant 0.000000e+00 : f32
    %22 = vector.broadcast %cst_17 : f32 to vector<152x160xf32>
    %23 = arith.maximumf %21, %22 : vector<152x160xf32>
    %24 = arith.truncf %23 : vector<152x160xf32> to vector<152x160xbf16>
    %c0_18 = arith.constant 0 : index
    %c0_19 = arith.constant 0 : index
    %25 = vector.load %arg8[%c0_18, %c0_19] : memref<160x128xbf16, #tpu.memory_space<vmem>>, vector<160x128xbf16>
    %cst_20 = arith.constant dense<0.000000e+00> : vector<152x128xf32>
    %26 = tpu.matmul %24, %25, %cst_20 {dimension_numbers = #tpu.dot_dimension_numbers<[1], [0], [0], [1], [0, 0, 1, 1], [], []>} : vector<152x160xbf16>, vector<160x128xbf16>, vector<152x128xf32> -> vector<152x128xf32>
    %c0_21 = arith.constant 0 : index
    %c0_22 = arith.constant 0 : index
    %27 = vector.load %arg9[%c0_21, %c0_22] : memref<1x128xf32, #tpu.memory_space<vmem>>, vector<1x128xf32>
    %28 = vector.broadcast %27 : vector<1x128xf32> to vector<152x128xf32>
    %29 = arith.addf %26, %28 : vector<152x128xf32>
    %cst_23 = arith.constant 0.000000e+00 : f32
    %30 = vector.broadcast %cst_23 : f32 to vector<152x128xf32>
    %31 = arith.maximumf %29, %30 : vector<152x128xf32>
    %c0_24 = arith.constant 0 : index
    %c0_25 = arith.constant 0 : index
    %32 = vector.load %arg10[%c0_24, %c0_25] : memref<152x128xf32, #tpu.memory_space<vmem>>, vector<152x128xf32>
    tpu.vector_store %arg10[%c0_24, %c0_25], %31 {strides = array<i32>} : memref<152x128xf32, #tpu.memory_space<vmem>>, vector<152x128xf32>,
    return
  }
  func.func @transform_0(%arg0: i32) -> (i32, i32) {
    %c0_i32 = arith.constant 0 : i32
    %c0_i32_0 = arith.constant 0 : i32
    return %arg0, %c0_i32 : i32, i32
  }
  func.func @transform_1(%arg0: i32) -> (i32, i32) {
    %c0_i32 = arith.constant 0 : i32
    %c0_i32_0 = arith.constant 0 : i32
    %c0_i32_1 = arith.constant 0 : i32
    return %c0_i32, %c0_i32_0 : i32, i32
  }
  func.func @transform_2(%arg0: i32) -> (i32, i32) {
    %c0_i32 = arith.constant 0 : i32
    %c0_i32_0 = arith.constant 0 : i32
    %c0_i32_1 = arith.constant 0 : i32
    return %c0_i32, %c0_i32_0 : i32, i32
  }
  func.func @transform_3(%arg0: i32) -> (i32, i32) {
    %c0_i32 = arith.constant 0 : i32
    %c0_i32_0 = arith.constant 0 : i32
    %c0_i32_1 = arith.constant 0 : i32
    return %c0_i32, %c0_i32_0 : i32, i32
  }
  func.func @transform_4(%arg0: i32) -> (i32, i32) {
    %c0_i32 = arith.constant 0 : i32
    %c0_i32_0 = arith.constant 0 : i32
    %c0_i32_1 = arith.constant 0 : i32
    return %c0_i32, %c0_i32_0 : i32, i32
  }
  func.func @transform_5(%arg0: i32) -> (i32, i32) {
    %c0_i32 = arith.constant 0 : i32
    %c0_i32_0 = arith.constant 0 : i32
    %c0_i32_1 = arith.constant 0 : i32
    return %c0_i32, %c0_i32_0 : i32, i32
  }
  func.func @transform_6(%arg0: i32) -> (i32, i32) {
    %c0_i32 = arith.constant 0 : i32
    %c0_i32_0 = arith.constant 0 : i32
    %c0_i32_1 = arith.constant 0 : i32
    return %c0_i32, %c0_i32_0 : i32, i32
  }
  func.func @transform_7(%arg0: i32) -> (i32, i32) {
    %c0_i32 = arith.constant 0 : i32
    %c0_i32_0 = arith.constant 0 : i32
    %c0_i32_1 = arith.constant 0 : i32
    return %c0_i32, %c0_i32_0 : i32, i32
  }
  func.func @transform_8(%arg0: i32) -> (i32, i32) {
    %c0_i32 = arith.constant 0 : i32
    %c0_i32_0 = arith.constant 0 : i32
    %c0_i32_1 = arith.constant 0 : i32
    return %c0_i32, %c0_i32_0 : i32, i32
  }
  func.func @transform_9(%arg0: i32) -> (i32, i32) {
    %c0_i32 = arith.constant 0 : i32
    %c0_i32_0 = arith.constant 0 : i32
    return %arg0, %c0_i32 : i32, i32
  }
}

</mosaic_0001>

<bundles_post_ra>
// kernel: tpu_custom_call.1
= control target key start
LH: loop header
LB: loop body
LE: loop exit
PB: predicated region body
PF: predicated region fallthrough
CT: control target
= control target key end

     0   :  { %14 = vsyncpa [#allocation3], 0  ;;  %s4884_s0 = inlined_call_operand.vmem [shape: bf16[304,128], index: 0, kind: input, shape index: {}]   ;;  %s4885_s1 = inlined_call_operand.vmem [shape: bf16[128,280], index: 1, kind: input, shape index: {}]   ;;  %s4886_s2 = inlined_call_operand.vmem [shape: f32[1,280], index: 2, kind: input, shape index: {}]   ;;  %s4887_s3 = inlined_call_operand.vmem [shape: bf16[280,288], index: 3, kind: input, shape index: {}]   ;;  %s4888_s4 = inlined_call_operand.vmem [shape: f32[1,288], index: 4, kind: input, shape index: {}]   ;;  %s4889_s5 = inlined_call_operand.vmem [shape: bf16[288,160], index: 5, kind: input, shape index: {}]   ;;  %s4890_s6 = inlined_call_operand.vmem [shape: f32[1,160], index: 6, kind: input, shape index: {}]   ;;  %s4891_s7 = inlined_call_operand.hbm [shape: bf16[160,128], index: 7, kind: input, shape index: {}]   ;;  %s4892_s8 = inlined_call_operand.vmem [shape: f32[1,128], index: 8, kind: input, shape index: {}]   ;;  %s4893_s9 = inlined_call_operand.hbm [shape: f32[304,128], index: 9, kind: output, shape index: {}]  }
   0x1   :  { %15 = vsyncpa [#allocation4], 0 }
   0x2   :  { %17 = vsyncpa [#allocation4 + $0x1], 0  ;;  %s3601_s30 = smov 0   ;;  %s3603_s10 = smov 0  }
   0x3   :  { %s3605_s11 = smov 0   ;;  %s3607_s12 = smov 0  }
   0x4 LB: > { %s3622_s13 = sadd.s32 4294967295, %s3542_s12   ;;  %s2849_s14 = sadd.s32 4294967294, %s3542_s12   ;;  %s3542_s12 = sphi %s3607_s12, %s4901_s12   ;;  %s3538_s11 = sphi %s3605_s11, %s4900_s11   ;;  %s3534_s10 = sphi %s3603_s10, %s4899_s10   ;;  %s3530_s30 = sphi %s3601_s30, %s4898_s30  }
   0x5   : > { %s3626_s15 = sadd.s32 1, %s3542_s12   ;;  %s224_s16 = sadd.s32 1, %s3538_s11 }
   0x6   : > { %s221_s17 = ssub.s32 %s3542_s12, %s3626_s15  ;;  %p234_p0 = scmp.ne.s32.totalorder %s3538_s11, %s3534_s10 }
   0x7   : > { %p222_p1 = scmp.eq.s32.totalorder %s221_s17, 0  ;;  %p235_p2 = scmp.eq.s32.totalorder %s3622_s13, 1 }
   0x8   : > { %p240_p3 = scmp.ne.s32.totalorder %s3534_s10, %s3530_s30  ;;  %p241_p4 = scmp.eq.s32.totalorder %s2849_s14, 1 }
   0x9   : > { %s3637_s18 = scalar_select %p222_p1, %s3538_s11, %s224_s16  }
   0xa   : > { %p3639_p5 = por %p235_p2, %p234_p0  ;;  %p3643_p6 = por %p241_p4, %p240_p3 }
   0xb   : > { %p2850_p7 = scmp.ge.s32.totalorder %s3542_s12, 1  ;;  %p248_p8 = scmp.lt.s32.totalorder %s3542_s12, 3 }
   0xc   : > { %s4895_s20 = scalar_select %p3643_p6, 1, 0 }
   0xd   : > { %p3234_p9 = scmp.eq.s32.totalorder %s3622_s13, 0  ;;  %p3650_p10 = pnand %p2850_p7, %p248_p8 }
   0xe   : > { %s3544_s22 = smov [#allocation2]  }
   0xf   : > { %s278_s23 = sshll.u32 %s3544_s22, 4  ;;  %p3226_p11 = pneg %p3650_p10  ;;  %s279_s23 = int_to_ptr.vmem [resolvable:$true] %s278_s23 }
  0x10   : > { %s3463_s24 = scalar_lea.vmem %s279_s23, 1280  ;;  %p3471_p3 = scmp.lt.s32.totalorder %s279_s23, %s279_s23 }
  0x11   : > { %p3227_p12 = pnand %p3234_p9, %p3226_p11  ;;  %p3464_p0 = scmp.ne.s32.totalorder %s279_s23, %s3463_s24 }
  0x12   : > { %p3472_p4 = scmp.lt.s32.totalorder %s3463_s24, %s3463_s24 }
  0x13   : > { %p3454_p13 = pneg %p3227_p12 }
  0x14   : > { %p3473_p6 = por %p3472_p4, %p3471_p3 }
  0x15   : > { %p3466_p1 = pnand %p3464_p0, %p3454_p13 }
  0x17   : > { %p3467_p2 = pneg %p3466_p1 }
  0x19   : > { %p3474_p7 = pnand %p3473_p6, %p3467_p2 }
  0x1b   : > { %3477 = shalt.err (!%p3474_p7)
}
  0x1c   : > { %s3545_s25 = smov 64   ;;  %s3546_s26 = smov 4  }
  0x1d   : > { %3229 = dma.hbm_to_vmem [thread:$0]  (!%p3227_p12), %s4891_s7, 1280, %s279_s23, [#allocation3], %s3545_s25, %s3545_s25, %s3546_s26  }
  0x1e   : > { %306 = sbr.rel (%p3650_p10) target bundleno = 1090 (0x442), region = 56 }
  0x23   : > { %3521 = dma.done.wait (%p3234_p9), [#allocation3], 1280  }
  0x24   : > { %3523 = vsyncadd (%p3234_p9), [#allocation3], 4294966016  ;;  %v3547_v0 = vmov 0   ;;  %s342_s29 = smul.u32 19, %s3622_s13  ;;  %v3275_v1 = vld [vmem:[%s4885_s1 + $0xac] ss:$12 sps:$4 sm:$0xff]  }
  0x25   : > { %636 = vmatprep.mubr.bf16.mxu0 %v3547_v0  ;;  %686 = vmatprep.mubr.bf16.mxu1 %v3547_v0  ;;  %v3277_v2 = vld [vmem:[%s4885_s1 + $0xa8] ss:$12 sps:$4 sm:$0xff]   ;;  %v3280_v4 = vld [vmem:[%s4885_s1 + $0x90] ss:$12 sps:$4 sm:$0xff]   ;;  %v3283_v6 = vld [vmem:[%s4885_s1 + $0x78] ss:$12 sps:$4 sm:$0xff]  }
  0x26   : > { %p343_p6 = scmp.lt.s32.totalorder %s342_s29, 37  ;;  %604 = vmatprep.subr.bf16.mxu0 %v3275_v1  ;;  %3202 = vmatprep.subr.bf16.mxu1 %v3275_v1  ;;  %v3278_v3 = vld [vmem:[%s4885_s1 + $0x94] ss:$12 sps:$4 sm:$0xff]   ;;  %v3281_v5 = vld [vmem:[%s4885_s1 + $0x7c] ss:$12 sps:$4 sm:$0xff]   ;;  %vm1332_vm0 = vcmask 1043456  }
  0x27   : > { %605 = vmatpush1.bf16.msra.mxu0 %v3277_v2  ;;  %3210 = vmatpush1.bf16.msra.mxu1 %v3277_v2  ;;  %v3284_v7 = vld [vmem:[%s4885_s1 + $0x64] ss:$12 sps:$4 sm:$0xff]   ;;  %v3286_v8 = vld [vmem:[%s4885_s1 + $0x60] ss:$12 sps:$4 sm:$0xff]   ;;  %v3289_v10 = vld [vmem:[%s4885_s1 + $0x48] ss:$12 sps:$4 sm:$0xff]  }
  0x28   : > { %s4903_s29 = smov (!%p343_p6, %s342_s29), 37  ;;  %606 = vmatprep.subr.bf16.mxu0 %v3278_v3  ;;  %3203 = vmatprep.subr.bf16.mxu1 %v3278_v3  ;;  %v3287_v9 = vld [vmem:[%s4885_s1 + $0x4c] ss:$12 sps:$4 sm:$0xff]   ;;  %v3290_v11 = vld [vmem:[%s4885_s1 + $0x34] ss:$12 sps:$4 sm:$0xff]   ;;  %vm1301_vm1 = vcmask 195584  }
  0x29   : > { %s2855_s28 = sshll.u32 %s4903_s29, 2  ;;  %v3292_v12 = vld [vmem:[%s4885_s1 + $0x30] ss:$12 sps:$4 sm:$0xff]   ;;  %v3295_v14 = vld [vmem:[%s4885_s1 + $0x18] ss:$12 sps:$4 sm:$0xff]   ;;  %vm2143_vm2 = vcmask 261120  }
  0x2a   : > { %s3694_s24 = scalar_lea.vmem %s4884_s0, %s2855_s28  ;;  %v3293_v13 = vld [vmem:[%s4885_s1 + $0x1c] ss:$12 sps:$4 sm:$0xff]   ;;  %v3296_v15 = vld [vmem:[%s4885_s1 + $0x4] ss:$12 sps:$4 sm:$0xff]   ;;  %v3298_v16 = vld [vmem:[%s4885_s1] ss:$12 sps:$4 sm:$0xff]  }
  0x2b   : > { %607 = vmatpush1.bf16.msra.mxu0 %v3280_v4  ;;  %3211 = vmatpush1.bf16.msra.mxu1 %v3280_v4  ;;  %v3301_v17 = vld [vmem:[%s4885_s1 + $0xb0] ss:$12 sps:$4 sm:$0xff]   ;;  %v3299_v18 = vld [vmem:[%s3694_s24] sm:$0xff]   ;;  %v3728_v19 = vld [vmem:[%s3694_s24 + $0x28] sm:$0xff]   ;;  %s339_s16 = sand.u32 1, %s3534_s10   ;;  %s3035_s22 = smul.u32 2432, %s3622_s13 }
  0x2c   : > { %608 = vmatprep.subr.bf16.mxu0 %v3281_v5  ;;  %3204 = vmatprep.subr.bf16.mxu1 %v3281_v5  ;;  %v3302_v20 = vld [vmem:[%s4885_s1 + $0x98] ss:$12 sps:$4 sm:$0xff]   ;;  %v3305_v21 = vld [vmem:[%s4885_s1 + $0x80] ss:$12 sps:$4 sm:$0xff]   ;;  %v3741_v23 = vld [vmem:[%s3694_s24 + $0x30] sm:$0xff]   ;;  %s3219_s28 = smul.u32 152, %s339_s16 }
  0x2d   : > { %v3303_v22 = vld [vmem:[%s3694_s24 + $0x8] sm:$0xff]   ;;  %v3309_v25 = vld [vmem:[%s4885_s1 + $0x50] ss:$12 sps:$4 sm:$0xff]   ;;  %v3312_v28 = vld [vmem:[%s4885_s1 + $0x38] ss:$12 sps:$4 sm:$0xff]   ;;  %s4837_s26 = scalar_lea.hbm %s4893_s9, %s3035_s22  ;;  %s4844_s13 = scalar_lea.sflag [#allocation4], %s339_s16 }
  0x2e   : > { %v3306_v24 = vld [vmem:[%s4885_s1 + $0x68] ss:$12 sps:$4 sm:$0xff]   ;;  %v3308_v27 = vld [vmem:[%s3694_s24 + $0x38] sm:$0xff]   ;;  %v3313_v29 = vld [vmem:[%s4885_s1 + $0x20] ss:$12 sps:$4 sm:$0xff]   ;;  %s3548_s14 = smov [#allocation5]  }
  0x2f   : > { %609 = vmatpush1.bf16.msra.mxu0 %v3283_v6  ;;  %3212 = vmatpush1.bf16.msra.mxu1 %v3283_v6  ;;  %v3307_v26 = vld [vmem:[%s3694_s24 + $0x10] sm:$0xff]   ;;  %v3310_v30 = vld [vmem:[%s3694_s24 + $0x18] sm:$0xff]   ;;  %v3311_v31 = vld [vmem:[%s3694_s24 + $0x40] sm:$0xff]  }
  0x30   : > { %610 = vmatprep.subr.bf16.mxu0 %v3284_v7  ;;  %3205 = vmatprep.subr.bf16.mxu1 %v3284_v7  ;;  %v3316_v32 = vld [vmem:[%s4885_s1 + $0x8] ss:$12 sps:$4 sm:$0xff]   ;;  %v3319_v33 = vld [vmem:[%s4887_s3 + $0xac] ss:$12 sps:$4 sm:$0xff]   ;;  %v3314_v34 = vld [vmem:[%s3694_s24 + $0x20] sm:$0xff]  }
  0x31   : > { %v3315_v35 = vld [vmem:[%s3694_s24 + $0x48] ss:$0 sps:$4 sm:$0xff]   ;;  %v3322_v37 = vld [vmem:[%s4887_s3 + $0x94] ss:$12 sps:$4 sm:$0xff]   ;;  %v3320_v38 = vld [vmem:[%s4887_s3 + $0x90] ss:$12 sps:$4 sm:$0xff]  }
  0x32   : > { %v3317_v36 = vld [vmem:[%s4887_s3 + $0xa8] ss:$12 sps:$4 sm:$0xff]   ;;  %v3323_v40 = vld [vmem:[%s4887_s3 + $0x78] ss:$12 sps:$4 sm:$0xff]   ;;  %v3326_v42 = vld [vmem:[%s4887_s3 + $0x60] ss:$12 sps:$4 sm:$0xff]  }
  0x33   : > { %611 = vmatpush1.bf16.msra.mxu0 %v3286_v8  ;;  %3213 = vmatpush1.bf16.msra.mxu1 %v3286_v8  ;;  %v3325_v39 = vld [vmem:[%s4887_s3 + $0x7c] ss:$12 sps:$4 sm:$0xff]   ;;  %v3328_v41 = vld [vmem:[%s4887_s3 + $0x64] ss:$12 sps:$4 sm:$0xff]   ;;  %v3331_v43 = vld [vmem:[%s4887_s3 + $0x4c] ss:$12 sps:$4 sm:$0xff]  }
  0x34   : > { %612 = vmatprep.subr.bf16.mxu0 %v3287_v9  ;;  %3206 = vmatprep.subr.bf16.mxu1 %v3287_v9  ;;  %v3329_v44 = vld [vmem:[%s4887_s3 + $0x48] ss:$12 sps:$4 sm:$0xff]   ;;  %v3332_v46 = vld [vmem:[%s4887_s3 + $0x30] ss:$12 sps:$4 sm:$0xff]   ;;  %v3335_v48 = vld [vmem:[%s4887_s3 + $0x18] ss:$12 sps:$4 sm:$0xff]  }
  0x35   : > { %v3334_v45 = vld [vmem:[%s4887_s3 + $0x34] ss:$12 sps:$4 sm:$0xff]   ;;  %v3337_v47 = vld [vmem:[%s4887_s3 + $0x1c] ss:$12 sps:$4 sm:$0xff]   ;;  %v3340_v49 = vld [vmem:[%s4887_s3 + $0x4] ss:$12 sps:$4 sm:$0xff]  }
  0x36   : > { %v3338_v50 = vld [vmem:[%s4887_s3] ss:$12 sps:$4 sm:$0xff]   ;;  %v3341_v52 = vld [vmem:[%s4887_s3 + $0x168] ss:$12 sps:$4 sm:$0xff]   ;;  %v3344_v54 = vld [vmem:[%s4887_s3 + $0x150] ss:$12 sps:$4 sm:$0xff]  }
  0x37   : > { %613 = vmatpush1.bf16.msra.mxu0 %v3289_v10  ;;  %3214 = vmatpush1.bf16.msra.mxu1 %v3289_v10  ;;  %v3343_v51 = vld [vmem:[%s4887_s3 + $0x16c] ss:$12 sps:$4 sm:$0xff]   ;;  %v3346_v53 = vld [vmem:[%s4887_s3 + $0x154] ss:$12 sps:$4 sm:$0xff]   ;;  %v3349_v55 = vld [vmem:[%s4887_s3 + $0x13c] ss:$12 sps:$4 sm:$0xff]  }
  0x38   : > { %614 = vmatprep.subr.bf16.mxu0 %v3290_v11  ;;  %3207 = vmatprep.subr.bf16.mxu1 %v3290_v11  ;;  %v3347_v56 = vld [vmem:[%s4887_s3 + $0x138] ss:$12 sps:$4 sm:$0xff]   ;;  %v3350_v58 = vld [vmem:[%s4887_s3 + $0x120] ss:$12 sps:$4 sm:$0xff]   ;;  %v3353_v1 = vld [vmem:[%s4887_s3 + $0x108] ss:$12 sps:$4 sm:$0xff]  }
  0x39   : > { %v3352_v57 = vld [vmem:[%s4887_s3 + $0x124] ss:$12 sps:$4 sm:$0xff]   ;;  %v1002_v59 = vld [vmem:[%s4887_s3 + $0x198] sm:$0xff]  ;;  %v3358_v2 = vld [vmem:[%s4887_s3 + $0xf4] ss:$12 sps:$4 sm:$0xff]   ;;  %s4794_s24 = scalar_lea.vmem [#allocation5], %s3219_s28 }
  0x3a   : > { %v3355_v60 = vld [vmem:[%s4887_s3 + $0x10c] ss:$12 sps:$4 sm:$0xff]   ;;  %v2942_v61 = vcombine.high %v1002_v59, %v1002_v59  ;;  %v2941_v62 = vcombine.low %v1002_v59, %v1002_v59  ;;  %v3356_v3 = vld [vmem:[%s4887_s3 + $0xf0] ss:$12 sps:$4 sm:$0xff]   ;;  %v3372_v11 = vld [vmem:[%s4887_s3 + $0x1a0] ss:$0 sps:$4 sm:$0xff]  }
  0x3b   : > { %615 = vmatpush1.bf16.msra.mxu0 %v3292_v12  ;;  %3215 = vmatpush1.bf16.msra.mxu1 %v3292_v12  ;;  %v3361_v4 = vld [vmem:[%s4887_s3 + $0xdc] ss:$12 sps:$4 sm:$0xff]   ;;  %v3359_v5 = vld [vmem:[%s4887_s3 + $0xd8] ss:$12 sps:$4 sm:$0xff]   ;;  %v3362_v7 = vld [vmem:[%s4887_s3 + $0xc0] ss:$12 sps:$4 sm:$0xff]  }
  0x3c   : > { %616 = vmatprep.subr.bf16.mxu0 %v3293_v13  ;;  %3208 = vmatprep.subr.bf16.mxu1 %v3293_v13  ;;  %v1334_v63 = vsel %vm1332_vm0, %v2941_v62, 0  ;;  %v3364_v6 = vld [vmem:[%s4887_s3 + $0xc4] ss:$12 sps:$4 sm:$0xff]   ;;  %v3367_v8 = vld [vmem:[%s4887_s3 + $0x180] ss:$12 sps:$4 sm:$0xff]   ;;  %v3889_v12 = vsel %vm1332_vm0, %v3372_v11, 0  ;;  %v403_v13 = vlaneseq }
  0x3d   : > { %v3369_v9 = vld [vmem:[%s4887_s3 + $0x184] ss:$12 sps:$4 sm:$0xff]   ;;  %s2775_s23 = sshll.u32 %s4794_s24, 4  ;;  %s3482_s28 = sshll.u32 %s3548_s14, 4  ;;  %s4839_s23 = int_to_ptr.vmem [resolvable:$true] %s2775_s23  ;;  %s3483_s28 = int_to_ptr.vmem [resolvable:$false] %s3482_s28 }
  0x3e   : > { %v3370_v10 = vld [vmem:[%s4887_s3 + $0x170] ss:$12 sps:$4 sm:$0xff]   ;;  %s3478_s27 = scalar_lea.vmem %s4839_s23, 2432  ;;  %s3484_s17 = scalar_lea.vmem %s3483_s28, 4864 }
  0x3f   : > { %617 = vmatpush1.bf16.msra.mxu0 %v3295_v14  ;;  %3216 = vmatpush1.bf16.msra.mxu1 %v3295_v14  ;;  %v3891_v14 = vshrl.u32 %v403_v13, 7  ;;  %p3479_p8 = scmp.ne.s32.totalorder %s4839_s23, %s3478_s27  ;;  %p3485_p11 = scmp.lt.s32.totalorder %s4839_s23, %s3483_s28 }
  0x40   : > { %618 = vmatprep.subr.bf16.mxu0 %v3296_v15  ;;  %3209 = vmatprep.subr.bf16.mxu1 %v3296_v15  ;;  %p3486_p12 = scmp.lt.s32.totalorder %s3484_s17, %s3478_s27 }
  0x41   : > { %v3894_v15 = vsub.s32 0, %v3891_v14  ;;  %p3480_p9 = pnand %p3479_p8, %p3639_p5 }
  0x42   : > { %p3487_p13 = por %p3486_p12, %p3485_p11 }
  0x43   : > { %619 = vmatpush1.bf16.msra.mxu0 %v3298_v16  ;;  %3217 = vmatpush1.bf16.msra.mxu1 %v3298_v16  ;;  %v3899_v16 = vld [vmem:[%s4886_s2] sm:$0x7]  ;;  %p3481_p10 = pneg %p3480_p9 }
  0x44   : > { %3142 = vmatprep.subr.bf16.mxu1 %v3301_v17  ;;  %2944 = vmatprep.subr.msk.bf16.mxu0 %vm1332_vm0, %v2942_v61 }
  0x45   : > { %p3488_p0 = pnand %p3487_p13, %p3481_p10 }
  0x46   : > { %637 = vmatmul.mubr.bf16.vlgmr.msra.gmra.mxu0 %v3299_v18  ;;  %687 = vmatmul.mubr.bf16.vlgmr.msra.gmra.mxu1 %v3728_v19 }
  0x47   : > { %3143 = vmatpush3.bf16.msra.mxu1 %v3301_v17  ;;  %646 = vmatprep.mubr.bf16.mxu0 %v3547_v0  ;;  %v3902_v17 = vsub.s32 1, %v3891_v14 }
  0x48   : > { %3144 = vmatprep.subr.bf16.mxu1 %v3302_v20  ;;  %696 = vmatprep.mubr.bf16.mxu1 %v3547_v0 }
  0x49   : > { %1486 = vmatpush1.bf16.msra.mxu0 %v1334_v63 }
  0x4a   : > { %1487 = vmatprep.subr.bf16.mxu0 %v3369_v9 }
  0x4b   : > { %3145 = vmatpush3.bf16.msra.mxu1 %v3302_v20 }
  0x4c   : > { %3146 = vmatprep.subr.bf16.mxu1 %v3305_v21 }
  0x4d   : > { %1488 = vmatpush1.bf16.msra.mxu0 %v3367_v8 }
  0x4e   : > { %647 = vmatmul.mubr.bf16.gmra.mxu0 %v3303_v22  ;;  %697 = vmatmul.mubr.bf16.gmra.mxu1 %v3741_v23 }
  0x4f   : > { %3147 = vmatpush3.bf16.msra.mxu1 %v3305_v21  ;;  %656 = vmatprep.mubr.bf16.mxu0 %v3547_v0  ;;  %v3912_v21 = vrot.slane %v3899_v16, %v3902_v17 }
  0x50   : > { %706 = vmatprep.mubr.bf16.mxu1 %v3547_v0  ;;  %3148 = vmatprep.subr.bf16.mxu1 %v3306_v24 }
  0x51   : > { %3218 = vmatprep.subr.msk.bf16.mxu0 %vm1332_vm0, %v3372_v11 }
  0x53   : > { %3149 = vmatpush3.bf16.msra.mxu1 %v3306_v24 }
  0x54   : > { %3150 = vmatprep.subr.bf16.mxu1 %v3309_v25 }
  0x56   : > { %657 = vmatmul.mubr.bf16.gmra.mxu0 %v3307_v26  ;;  %707 = vmatmul.mubr.bf16.gmra.mxu1 %v3308_v27 }
  0x57   : > { %3151 = vmatpush3.bf16.msra.mxu1 %v3309_v25  ;;  %666 = vmatprep.mubr.bf16.mxu0 %v3547_v0 }
  0x58   : > { %716 = vmatprep.mubr.bf16.mxu1 %v3547_v0  ;;  %3152 = vmatprep.subr.bf16.mxu1 %v3312_v28 }
  0x5b   : > { %3153 = vmatpush3.bf16.msra.mxu1 %v3312_v28 }
  0x5c   : > { %3154 = vmatprep.subr.bf16.mxu1 %v3313_v29 }
  0x5e   : > { %667 = vmatmul.mubr.bf16.gmra.mxu0 %v3310_v30  ;;  %717 = vmatmul.mubr.bf16.gmra.mxu1 %v3311_v31 }
  0x5f   : > { %676 = vmatprep.mubr.bf16.mxu0 %v3547_v0  ;;  %726 = vmatprep.mubr.bf16.mxu1 %v3547_v0 }
  0x60   : > { %3155 = vmatpush3.bf16.msra.mxu1 %v3313_v29 }
  0x61   : > { %3156 = vmatprep.subr.bf16.mxu1 %v3316_v32 }
  0x64   : > { %3157 = vmatpush3.bf16.msra.mxu1 %v3316_v32 }
  0x65   : > { %1342 = vmatprep.subr.bf16.mxu1 %v3319_v33 }
  0x66   : > { %677 = vmatmul.mubr.bf16.gmra.mxu0 %v3314_v34  ;;  %727 = vmatmul.mubr.bf16.gmra.mxu1 %v3315_v35 }
  0x67   : > { %3158 = vmatprep.mubr.bf16.mxu1 %v3299_v18  ;;  %1505 = vmatprep.mubr.bf16.mxu0 %v3547_v0  ;;  %v3906_v18 = vrot.slane %v3899_v16, %v3894_v15 }
  0x6e   : > { %3159 = vmatmul.mubr.bf16.vlgmr.msra.gmra.mxu1 %v3303_v22 }
  0x6f   : > { %3162 = vmatprep.mubr.bf16.mxu1 %v3307_v26  ;;  %1343 = vmatpush1.bf16.msra.mxu1 %v3317_v36 }
  0x70   : > { %1344 = vmatprep.subr.bf16.mxu1 %v3322_v37 }
  0x73   : > { %1345 = vmatpush1.bf16.msra.mxu1 %v3320_v38 }
  0x74   : > { %1346 = vmatprep.subr.bf16.mxu1 %v3325_v39 }
  0x76   : > { %3163 = vmatmul.mubr.bf16.gmra.mxu1 %v3310_v30 }
  0x77   : > { %3166 = vmatprep.mubr.bf16.mxu1 %v3314_v34  ;;  %1347 = vmatpush1.bf16.msra.mxu1 %v3323_v40 }
  0x78   : > { %1348 = vmatprep.subr.bf16.mxu1 %v3328_v41 }
  0x7b   : > { %1349 = vmatpush1.bf16.msra.mxu1 %v3326_v42 }
  0x7c   : > { %1350 = vmatprep.subr.bf16.mxu1 %v3331_v43 }
  0x7e   : > { %3167 = vmatmul.mubr.bf16.gmra.mxu1 %v3728_v19 }
  0x7f   : > { %3170 = vmatprep.mubr.bf16.mxu1 %v3741_v23  ;;  %1351 = vmatpush1.bf16.msra.mxu1 %v3329_v44  ;;  %v3371_v44 = vld [vmem:[%s4887_s3 + $0xb0] ss:$12 sps:$4 sm:$0xff]  }
  0x80   : > { %1352 = vmatprep.subr.bf16.mxu1 %v3334_v45 }
  0x83   : > { %1353 = vmatpush1.bf16.msra.mxu1 %v3332_v46 }
  0x84   : > { %1354 = vmatprep.subr.bf16.mxu1 %v3337_v47  ;;  %v3373_v47 = vld [vmem:[%s4887_s3 + $0x158] ss:$12 sps:$4 sm:$0xff]  }
  0x86   : > { %3171 = vmatmul.mubr.bf16.gmra.mxu1 %v3308_v27 }
  0x87   : > { %3174 = vmatprep.mubr.bf16.mxu1 %v3311_v31  ;;  %1355 = vmatpush1.bf16.msra.mxu1 %v3335_v48 }
  0x88   : > { %1356 = vmatprep.subr.bf16.mxu1 %v3340_v49 }
  0x8b   : > { %1357 = vmatpush1.bf16.msra.mxu1 %v3338_v50 }
  0x8c   : > { %1358 = vmatprep.subr.bf16.mxu1 %v3343_v51 }
  0x8e   : > { %3175 = vmatmul.mubr.bf16.gmra.mxu1 %v3315_v35 }
  0x8f   : > { %1359 = vmatpush2.bf16.msra.mxu1 %v3341_v52 }
  0x90   : > { %1360 = vmatprep.subr.bf16.mxu1 %v3346_v53 }
  0x93   : > { %1361 = vmatpush2.bf16.msra.mxu1 %v3344_v54 }
  0x94   : > { %1362 = vmatprep.subr.bf16.mxu1 %v3349_v55  ;;  %v3374_v55 = vld [vmem:[%s4887_s3 + $0x98] ss:$12 sps:$4 sm:$0xff]  }
  0x97   : > { %1363 = vmatpush2.bf16.msra.mxu1 %v3347_v56 }
  0x98   : > { %1364 = vmatprep.subr.bf16.mxu1 %v3352_v57 }
  0x9b   : > { %1365 = vmatpush2.bf16.msra.mxu1 %v3350_v58  ;;  %v3375_v58 = vld [vmem:[%s4887_s3 + $0x140] ss:$12 sps:$4 sm:$0xff]  }
  0x9c   : > { %1366 = vmatprep.subr.bf16.mxu1 %v3355_v60 }
  0x9f   : > { %1367 = vmatpush2.bf16.msra.mxu1 %v3353_v1 }
  0xa0   : > { %1368 = vmatprep.subr.bf16.mxu1 %v3358_v2 }
  0xa3   : > { %1369 = vmatpush2.bf16.msra.mxu1 %v3356_v3  ;;  %v3376_v3 = vld [vmem:[%s4887_s3 + $0x80] ss:$12 sps:$4 sm:$0xff]  }
  0xa4   : > { %1370 = vmatprep.subr.bf16.mxu1 %v3361_v4 }
  0xa7   : > { %1371 = vmatpush2.bf16.msra.mxu1 %v3359_v5 }
  0xa8   : > { %1372 = vmatprep.subr.bf16.mxu1 %v3364_v6  ;;  %v3377_v6 = vld [vmem:[%s4887_s3 + $0x128] ss:$12 sps:$4 sm:$0xff]  }
  0xab   : > { %1373 = vmatpush2.bf16.msra.mxu1 %v3362_v7 }
  0xac   : > { %3054 = vmatprep.subr.bf16.mxu1 %v3370_v10 }
 0x106   : > { %v638_v19 = vpop.f32.mrf.mxu0  ;;  %v3908_v20 = vpop.f32.mrf.mxu1 }
 0x107   : > { %v639_v22 = vadd.f32 %v638_v19, %v3906_v18 }
 0x108   : > { %v640_v23 = vpop.f32.mrf.mxu0  ;;  %v3915_v24 = vpop.f32.mrf.mxu1 }
 0x109   : > { %v641_v25 = vadd.f32 %v640_v23, %v3912_v21  ;;  %v847_v29 = vmax.f32 %v639_v22, 0.0  ;;  %v3378_v22 = vld [vmem:[%s4887_s3 + $0x68] ss:$12 sps:$4 sm:$0xff]  }
 0x10a   : > { %v642_v26 = vpop.f32.mrf.mxu0  ;;  %v3918_v27 = vpop.f32.mrf.mxu1 }
 0x10b   : > { %v643_v28 = vadd.f32 %v642_v26, %v3906_v18  ;;  %v848_v32 = vmax.f32 %v641_v25, 0.0  ;;  %v3379_v26 = vld [vmem:[%s4887_s3 + $0x110] ss:$12 sps:$4 sm:$0xff]  }
 0x10c   : > { %v644_v30 = vpop.f32.mrf.mxu0  ;;  %v3921_v31 = vpop.f32.mrf.mxu1 }
 0x10d   : > { %v850_v33 = vmax.f32 %v643_v28, 0.0  ;;  %v645_v34 = vadd.f32 %v644_v30, %v3912_v21 }
 0x10e   : > { %v648_v35 = vpop.f32.mrf.mxu0  ;;  %v3924_v36 = vpop.f32.mrf.mxu1 }
 0x10f   : > { %v851_v37 = vmax.f32 %v645_v34, 0.0  ;;  %v3926_v38 = vpack.c.bf16 %v850_v33, %v847_v29  ;;  %v649_v39 = vadd.f32 %v648_v35, %v3906_v18 }
 0x110   : > { %v650_v40 = vpop.f32.mrf.mxu0  ;;  %v3929_v41 = vpop.f32.mrf.mxu1 }
 0x111   : > { %v651_v42 = vadd.f32 %v650_v40, %v3912_v21  ;;  %v3932_v43 = vpack.c.bf16 %v851_v37, %v848_v32  ;;  %v853_v49 = vmax.f32 %v649_v39, 0.0  ;;  %v3380_v37 = vld [vmem:[%s4887_s3 + $0x50] ss:$12 sps:$4 sm:$0xff]  }
 0x112   : > { %v652_v45 = vpop.f32.mrf.mxu0  ;;  %v3937_v46 = vpop.f32.mrf.mxu1 }
 0x113   : > { %v653_v48 = vadd.f32 %v652_v45, %v3906_v18  ;;  %1374 = vmatprep.mubr.bf16.mxu1 %v3932_v43  ;;  %v854_v52 = vmax.f32 %v651_v42, 0.0  ;;  %v3381_v42 = vld [vmem:[%s4887_s3 + $0xf8] ss:$12 sps:$4 sm:$0xff]  }
 0x114   : > { %v654_v50 = vpop.f32.mrf.mxu0  ;;  %v3944_v51 = vpop.f32.mrf.mxu1  ;;  %1375 = vmatmul.mubr.bf16.vlgmr.msra.gmra.mxu1 %v3926_v38 }
 0x115   : > { %v856_v53 = vmax.f32 %v653_v48, 0.0  ;;  %v655_v54 = vadd.f32 %v654_v50, %v3912_v21  ;;  %3055 = vmatpush3.bf16.msra.mxu1 %v3371_v44 }
 0x116   : > { %v658_v56 = vpop.f32.mrf.mxu0  ;;  %v3951_v57 = vpop.f32.mrf.mxu1  ;;  %3056 = vmatprep.subr.bf16.mxu1 %v3373_v47 }
 0x117   : > { %v857_v59 = vmax.f32 %v655_v54, 0.0  ;;  %v3956_v60 = vpack.c.bf16 %v856_v53, %v853_v49  ;;  %v659_v61 = vadd.f32 %v658_v56, %v3906_v18  ;;  %v3382_v53 = vld [vmem:[%s4887_s3 + $0x38] ss:$12 sps:$4 sm:$0xff]   ;;  %v3383_v56 = vld [vmem:[%s4887_s3 + $0xe0] ss:$12 sps:$4 sm:$0xff]  }
 0x118   : > { %v660_v62 = vpop.f32.mrf.mxu0  ;;  %v3959_v63 = vpop.f32.mrf.mxu1 }
 0x119   : > { %v661_v1 = vadd.f32 %v660_v62, %v3912_v21  ;;  %v3962_v2 = vpack.c.bf16 %v857_v59, %v854_v52  ;;  %3057 = vmatpush3.bf16.msra.mxu1 %v3374_v55  ;;  %v859_v8 = vmax.f32 %v659_v61, 0.0 }
 0x11a   : > { %v662_v4 = vpop.f32.mrf.mxu0  ;;  %v3967_v5 = vpop.f32.mrf.mxu1  ;;  %3058 = vmatprep.subr.bf16.mxu1 %v3375_v58 }
 0x11b   : > { %v663_v7 = vadd.f32 %v662_v4, %v3906_v18  ;;  %1384 = vmatprep.mubr.bf16.mxu1 %v3962_v2  ;;  %v860_v11 = vmax.f32 %v661_v1, 0.0 }
 0x11c   : > { %v664_v9 = vpop.f32.mrf.mxu0  ;;  %v3974_v10 = vpop.f32.mrf.mxu1  ;;  %1385 = vmatmul.mubr.bf16.gmra.mxu1 %v3956_v60 }
 0x11d   : > { %v862_v13 = vmax.f32 %v663_v7, 0.0  ;;  %v665_v19 = vadd.f32 %v664_v9, %v3912_v21  ;;  %3059 = vmatpush3.bf16.msra.mxu1 %v3376_v3  ;;  %v3385_v9 = vld [vmem:[%s4887_s3 + $0xc8] ss:$12 sps:$4 sm:$0xff]  }
 0x11e   : > { %v668_v23 = vpop.f32.mrf.mxu0  ;;  %v3981_v25 = vpop.f32.mrf.mxu1  ;;  %3060 = vmatprep.subr.bf16.mxu1 %v3377_v6  ;;  %v3384_v6 = vld [vmem:[%s4887_s3 + $0x20] ss:$12 sps:$4 sm:$0xff]  }
 0x11f   : > { %v863_v28 = vmax.f32 %v665_v19, 0.0  ;;  %v3986_v29 = vpack.c.bf16 %v862_v13, %v859_v8  ;;  %v669_v30 = vadd.f32 %v668_v23, %v3906_v18 }
 0x120   : > { %v670_v32 = vpop.f32.mrf.mxu0  ;;  %v3989_v33 = vpop.f32.mrf.mxu1 }
 0x121   : > { %v671_v34 = vadd.f32 %v670_v32, %v3912_v21  ;;  %v3992_v35 = vpack.c.bf16 %v863_v28, %v860_v11  ;;  %3061 = vmatpush3.bf16.msra.mxu1 %v3378_v22  ;;  %v865_v45 = vmax.f32 %v669_v30, 0.0  ;;  %v695_v11 = vadd.f32 %v3921_v31, %v3912_v21  ;;  %v3386_v31 = vld [vmem:[%s4887_s3 + $0x8] ss:$12 sps:$4 sm:$0xff]  }
 0x122   : > { %v672_v39 = vpop.f32.mrf.mxu0  ;;  %v3997_v40 = vpop.f32.mrf.mxu1  ;;  %3062 = vmatprep.subr.bf16.mxu1 %v3379_v26  ;;  %v413_v26 = vsub.s32 2, %v3891_v14  ;;  %v691_v28 = vadd.f32 %v3915_v24, %v3912_v21 }
 0x123   : > { %v673_v44 = vadd.f32 %v672_v39, %v3906_v18  ;;  %1394 = vmatprep.mubr.bf16.mxu1 %v3992_v35  ;;  %v866_v49 = vmax.f32 %v671_v34, 0.0  ;;  %v881_v39 = vmax.f32 %v695_v11, 0.0 }
 0x124   : > { %v674_v47 = vpop.f32.mrf.mxu0  ;;  %v4004_v48 = vpop.f32.mrf.mxu1  ;;  %1395 = vmatmul.mubr.bf16.gmra.mxu1 %v3986_v29  ;;  %v4047_v24 = vrot.slane %v3899_v16, %v413_v26  ;;  %v689_v16 = vadd.f32 %v3908_v20, %v3906_v18 }
 0x125   : > { %v868_v50 = vmax.f32 %v673_v44, 0.0  ;;  %v675_v52 = vadd.f32 %v674_v47, %v3912_v21  ;;  %3063 = vmatpush3.bf16.msra.mxu1 %v3380_v37  ;;  %v878_v47 = vmax.f32 %v691_v28, 0.0  ;;  %v715_v28 = vadd.f32 %v3974_v10, %v3912_v21  ;;  %v3390_v10 = vld [vmem:[%s4889_s5 + $0x74] ss:$8 sps:$4 sm:$0xff]  }
 0x126   : > { %v678_v54 = vpop.f32.mrf.mxu0  ;;  %v4011_v55 = vpop.f32.mrf.mxu1  ;;  %3064 = vmatprep.subr.bf16.mxu1 %v3381_v42 }
 0x127   : > { %v869_v58 = vmax.f32 %v675_v52, 0.0  ;;  %v4016_v59 = vpack.c.bf16 %v868_v50, %v865_v45  ;;  %v679_v61 = vadd.f32 %v678_v54, %v3906_v18  ;;  %v693_v50 = vadd.f32 %v3918_v27, %v3906_v18 }
 0x128   : > { %v680_v62 = vpop.f32.mrf.mxu0  ;;  %v4019_v1 = vpop.f32.mrf.mxu1 }
 0x129   : > { %v681_v3 = vadd.f32 %v680_v62, %v3912_v21  ;;  %v4022_v4 = vpack.c.bf16 %v869_v58, %v866_v49  ;;  %3065 = vmatpush3.bf16.msra.mxu1 %v3382_v53  ;;  %v871_v19 = vmax.f32 %v679_v61, 0.0  ;;  %v705_v53 = vadd.f32 %v3944_v51, %v3912_v21 }
 0x12a   : > { %v682_v7 = vpop.f32.mrf.mxu0  ;;  %v732_v8 = vpop.f32.mrf.mxu1  ;;  %3066 = vmatprep.subr.bf16.mxu1 %v3383_v56  ;;  %v4057_v56 = vpack.c.bf16 %v881_v39, %v878_v47  ;;  %v701_v61 = vadd.f32 %v3929_v41, %v3912_v21  ;;  %v880_v51 = vmax.f32 %v693_v50, 0.0  ;;  %v703_v41 = vadd.f32 %v3937_v46, %v3906_v18 }
 0x12b   : > { %v683_v13 = vadd.f32 %v682_v7, %v3906_v18  ;;  %1404 = vmatprep.mubr.bf16.mxu1 %v4022_v4  ;;  %v872_v30 = vmax.f32 %v681_v3, 0.0  ;;  %v887_v3 = vmax.f32 %v705_v53, 0.0  ;;  %v877_v8 = vmax.f32 %v689_v16, 0.0 }
 0x12c   : > { %v684_v22 = vpop.f32.mrf.mxu0  ;;  %v733_v23 = vpop.f32.mrf.mxu1  ;;  %1405 = vmatmul.mubr.bf16.gmra.mxu1 %v4016_v59  ;;  %v884_v11 = vmax.f32 %v701_v61, 0.0  ;;  %v713_v16 = vadd.f32 %v3967_v5, %v3906_v18  ;;  %v725_v61 = vadd.f32 %v4004_v48, %v3912_v21  ;;  %v721_v5 = vadd.f32 %v3989_v33, %v3912_v21 }
 0x12d   : > { %v874_v32 = vmax.f32 %v683_v13, 0.0  ;;  %v685_v34 = vadd.f32 %v684_v22, %v3912_v21  ;;  %3067 = vmatpush3.bf16.msra.mxu1 %v3384_v6  ;;  %v3387_v23 = vld [vmem:[%s4887_s3 + $0x188] ss:$12 sps:$4 sm:$0xff]   ;;  %v723_v33 = vadd.f32 %v3997_v40, %v3906_v18 }
 0x12e   : > { %v3160_v37 = vpop.f32.mrf.mxu1  ;;  %3068 = vmatprep.subr.bf16.mxu1 %v3385_v9  ;;  %v892_v48 = vmax.f32 %v713_v16, 0.0 }
 0x12f   : > { %v875_v42 = vmax.f32 %v685_v34, 0.0  ;;  %v4042_v44 = vpack.c.bf16 %v874_v32, %v871_v19  ;;  %v4069_v19 = vpack.c.bf16 %v880_v51, %v877_v8  ;;  %v4081_v32 = vpack.c.bf16 %v887_v3, %v884_v11 }
 0x130   : > { %v769_v45 = vpop.f32.mrf.mxu1  ;;  %v699_v34 = vadd.f32 %v3924_v36, %v3906_v18  ;;  %v893_v36 = vmax.f32 %v715_v28, 0.0  ;;  %v709_v51 = vadd.f32 %v3951_v57, %v3906_v18  ;;  %v898_v40 = vmax.f32 %v723_v33, 0.0 }
 0x131   : > { %v4049_v49 = vpack.c.bf16 %v875_v42, %v872_v30  ;;  %3069 = vmatpush3.bf16.msra.mxu1 %v3386_v31  ;;  %v770_v54 = vadd.f32 %v769_v45, %v4047_v24  ;;  %v778_v30 = vadd.f32 %v3160_v37, %v4047_v24  ;;  %v711_v31 = vadd.f32 %v3959_v63, %v3912_v21 }
 0x132   : > { %v3161_v52 = vpop.f32.mrf.mxu1  ;;  %v886_v37 = vmax.f32 %v703_v41, 0.0  ;;  %v889_v11 = vmax.f32 %v709_v51, 0.0  ;;  %v896_v41 = vmax.f32 %v721_v5, 0.0 }
 0x133   : > { %1414 = vmatprep.mubr.bf16.mxu1 %v4049_v49  ;;  %v849_v6 = vmax.f32 %v770_v54, 0.0  ;;  %v781_v20 = vadd.f32 %v3161_v52, %v4047_v24  ;;  %v855_v45 = vmax.f32 %v778_v30, 0.0  ;;  %v890_v50 = vmax.f32 %v711_v31, 0.0 }
 0x134   : > { %v772_v58 = vpop.f32.mrf.mxu1  ;;  %1415 = vmatmul.mubr.bf16.gmra.mxu1 %v4042_v44  ;;  %v4121_v30 = vpack.c.bf16 %v892_v48, %v889_v11 }
 0x135   : > { %v773_v27 = vadd.f32 %v772_v58, %v4047_v24  ;;  %1424 = vmatprep.mubr.bf16.mxu1 %v4057_v56  ;;  %v858_v39 = vmax.f32 %v781_v20, 0.0 }
 0x136   : > { %v3164_v62 = vpop.f32.mrf.mxu1 }
 0x137   : > { %v852_v7 = vmax.f32 %v773_v27, 0.0  ;;  %v4096_v63 = vpack.c.bf16 %v858_v39, %v855_v45  ;;  %v4108_v27 = vpack.c.bf16 %v893_v36, %v890_v50  ;;  %v794_v57 = vadd.f32 %v3164_v62, %v4047_v24 }
 0x138   : > { %v785_v9 = vpop.f32.mrf.mxu1  ;;  %v719_v62 = vadd.f32 %v3981_v25, %v3906_v18 }
 0x139   : > { %v4067_v13 = vpack.c.bf16 %v852_v7, %v849_v6  ;;  %v786_v52 = vadd.f32 %v785_v9, %v4047_v24  ;;  %v899_v9 = vmax.f32 %v725_v61, 0.0  ;;  %v867_v39 = vmax.f32 %v794_v57, 0.0 }
 0x13a   : > { %v3165_v22 = vpop.f32.mrf.mxu1 }
 0x13b   : > { %2945 = vmatmul.mubr.msk.bf16.vlgmr.msra.gmra.mxu0 %vm1301_vm1, %v4067_v13  ;;  %v861_v6 = vmax.f32 %v786_v52, 0.0  ;;  %v4129_v31 = vpack.c.bf16 %v899_v9, %v896_v41  ;;  %v729_v52 = vadd.f32 %v4011_v55, %v3906_v18 }
 0x13c   : > { %1425 = vmatmul.mubr.bf16.gmra.mxu1 %v4069_v19  ;;  %3179 = vmatpush3.bf16.msra.mxu0 %v3889_v12  ;;  %v788_v46 = vpop.f32.mrf.mxu1  ;;  %v883_v12 = vmax.f32 %v699_v34, 0.0 }
 0x13d   : > { %1434 = vmatprep.mubr.bf16.mxu1 %v4081_v32  ;;  %1515 = vmatprep.mubr.bf16.mxu0 %v3547_v0  ;;  %v789_v53 = vadd.f32 %v788_v46, %v4047_v24  ;;  %v731_v46 = vadd.f32 %v4019_v1, %v3912_v21  ;;  %v895_v1 = vmax.f32 %v719_v62, 0.0 }
 0x13e   : > { %v4094_v42 = vpop.f32.mrf.mxu1  ;;  %3180 = vmatprep.subr.bf16.mxu0 %v3387_v23  ;;  %v4100_v54 = vpack.c.bf16 %v886_v37, %v883_v12 }
 0x13f   : > { %v864_v7 = vmax.f32 %v789_v53, 0.0  ;;  %v902_v21 = vmax.f32 %v731_v46, 0.0  ;;  %v4140_v50 = vpack.c.bf16 %v898_v40, %v895_v1  ;;  %v3412_v40 = vld [vmem:[%s4889_s5 + $0xf0] ss:$8 sps:$4 sm:$0xff]   ;;  %v3420_v1 = vld [vmem:[%s4889_s5 + $0xd4] ss:$8 sps:$4 sm:$0xff]  }
 0x140   : > { %v801_v47 = vpop.f32.mrf.mxu1  ;;  %3181 = vmatpush3.bf16.msra.mxu0 %v3387_v23  ;;  %v797_v23 = vadd.f32 %v3165_v22, %v4047_v24 }
 0x141   : > { %2174 = vmatprep.subr.bf16.mxu0 %v3390_v10  ;;  %v4119_v28 = vpack.c.bf16 %v864_v7, %v861_v6  ;;  %v802_v12 = vadd.f32 %v801_v47, %v4047_v24  ;;  %v4144_v16 = vpack.c.bf16 %v902_v21, %v902_v21  ;;  %v901_v47 = vmax.f32 %v729_v52, 0.0  ;;  %v3415_v21 = vld [vmem:[%s4889_s5 + $0xe0] ss:$8 sps:$4 sm:$0xff]   ;;  %v3426_v52 = vld [vmem:[%s4889_s5 + $0xb4] ss:$8 sps:$4 sm:$0xff]  }
 0x142   : > { %v3169_v58 = vpop.f32.mrf.mxu1  ;;  %v870_v10 = vmax.f32 %v797_v23, 0.0 }
 0x143   : > { %2946 = vmatmul.mubr.msk.bf16.gmra.mxu0 %vm1301_vm1, %v4096_v63  ;;  %v873_v61 = vmax.f32 %v802_v12, 0.0  ;;  %v813_v18 = vadd.f32 %v3169_v58, %v4047_v24  ;;  %v4156_v5 = vpack.c.bf16 %v901_v47, %v901_v47  ;;  %v3439_v12 = vld [vmem:[%s4889_s5 + $0x100] ss:$8 sps:$4 sm:$0xff]   ;;  %v3430_v47 = vld [vmem:[%s4889_s5 + $0x90] ss:$8 sps:$4 sm:$0xff]  }
 0x144   : > { %1435 = vmatmul.mubr.bf16.gmra.mxu1 %v4100_v54  ;;  %1525 = vmatprep.mubr.bf16.mxu0 %v3547_v0  ;;  %v804_v3 = vpop.f32.mrf.mxu1  ;;  %v4136_v45 = vpack.c.bf16 %v870_v10, %v867_v39  ;;  %v3406_v39 = vld [vmem:[%s4889_s5 + $0x10] ss:$8 sps:$4 sm:$0xff]   ;;  %v3414_v10 = vld [vmem:[%s4889_s5 + $0xf4] ss:$8 sps:$4 sm:$0xff]  }
 0x145   : > { %1444 = vmatprep.mubr.bf16.mxu1 %v4108_v27  ;;  %v805_v25 = vadd.f32 %v804_v3, %v4047_v24  ;;  %v810_v3 = vadd.f32 %v4094_v42, %v4047_v24  ;;  %v882_v7 = vmax.f32 %v813_v18, 0.0  ;;  %v3433_v18 = vld [vmem:[%s4889_s5 + $0x80] ss:$8 sps:$4 sm:$0xff]  }
 0x146   : > { %v3172_v8 = vpop.f32.mrf.mxu1 }
 0x147   : > { %v876_v51 = vmax.f32 %v805_v25, 0.0  ;;  %v879_v6 = vmax.f32 %v810_v3, 0.0  ;;  %v826_v41 = vadd.f32 %v3172_v8, %v4047_v24  ;;  %v3441_v25 = vld [vmem:[%s4889_s5 + $0x104] ss:$8 sps:$4 sm:$0xff]  }
 0x148   : > { %v817_v20 = vpop.f32.mrf.mxu1  ;;  %v3435_v3 = vld [vmem:[%s4889_s5 + $0x84] ss:$8 sps:$4 sm:$0xff]  }
 0x149   : > { %v4154_v55 = vpack.c.bf16 %v876_v51, %v873_v61  ;;  %v4163_v48 = vpack.c.bf16 %v882_v7, %v879_v6  ;;  %v818_v42 = vadd.f32 %v817_v20, %v4047_v24  ;;  %v891_v20 = vmax.f32 %v826_v41, 0.0  ;;  %v3427_v61 = vld [vmem:[%s4889_s5 + $0xa0] ss:$8 sps:$4 sm:$0xff]   ;;  %v3432_v51 = vld [vmem:[%s4889_s5 + $0x94] ss:$8 sps:$4 sm:$0xff]  }
 0x14a   : > { %v3173_v34 = vpop.f32.mrf.mxu1 }
 0x14b   : > { %2947 = vmatmul.mubr.msk.bf16.gmra.mxu0 %vm1301_vm1, %v4119_v28  ;;  %v885_v9 = vmax.f32 %v818_v42, 0.0 }
 0x14c   : > { %1445 = vmatmul.mubr.bf16.gmra.mxu1 %v4121_v30  ;;  %1535 = vmatprep.mubr.bf16.mxu0 %v3547_v0  ;;  %v820_v22 = vpop.f32.mrf.mxu1 }
 0x14d   : > { %1454 = vmatprep.mubr.bf16.mxu1 %v4129_v31  ;;  %v821_v58 = vadd.f32 %v820_v22, %v4047_v24 }
 0x14e   : > { %v3176_v37 = vpop.f32.mrf.mxu1 }
 0x14f   : > { %v888_v11 = vmax.f32 %v821_v58, 0.0 }
 0x150   : > { %v833_v36 = vpop.f32.mrf.mxu1 }
 0x151   : > { %v924_v57 = vpack.c.bf16 %v888_v11, %v885_v9 }
 0x152   : > { %v3177_v53 = vpop.f32.mrf.mxu1 }
 0x153   : > { %2948 = vmatmul.mubr.msk.bf16.gmra.mxu0 %vm1301_vm1, %v4136_v45  ;;  %v3424_v53 = vld [vmem:[%s4889_s5 + $0xb0] ss:$8 sps:$4 sm:$0xff]  }
 0x154   : > { %1455 = vmatmul.mubr.bf16.gmra.mxu1 %v4140_v50  ;;  %1545 = vmatprep.mubr.bf16.mxu0 %v3547_v0 }
 0x155   : > { %1464 = vmatprep.mubr.bf16.mxu1 %v4144_v16 }
 0x15b   : > { %2949 = vmatmul.mubr.msk.bf16.gmra.mxu0 %vm1301_vm1, %v4154_v55 }
 0x15c   : > { %1465 = vmatmul.mubr.bf16.gmra.mxu1 %v4156_v5  ;;  %1555 = vmatprep.mubr.bf16.mxu0 %v3547_v0 }
 0x15d   : > { %1636 = vmatprep.mubr.bf16.mxu1 %v3932_v43  ;;  %v829_v43 = vadd.f32 %v3173_v34, %v4047_v24 }
 0x15f   : > { %v894_v23 = vmax.f32 %v829_v43, 0.0 }
 0x161   : > { %v4178_v33 = vpack.c.bf16 %v894_v23, %v891_v20 }
 0x163   : > { %2950 = vmatmul.mubr.msk.bf16.gmra.mxu0 %vm1301_vm1, %v4163_v48 }
 0x164   : > { %1637 = vmatmul.mubr.bf16.vlgmr.msra.gmra.mxu1 %v3926_v38  ;;  %1565 = vmatprep.mubr.bf16.mxu0 %v3547_v0  ;;  %v836_v38 = vpop.f32.mrf.mxu1 }
 0x165   : > { %1644 = vmatprep.mubr.bf16.mxu1 %v3962_v2  ;;  %v834_v2 = vadd.f32 %v833_v36, %v4047_v24  ;;  %v837_v8 = vadd.f32 %v836_v38, %v4047_v24  ;;  %v3418_v36 = vld [vmem:[%s4889_s5 + $0xd0] ss:$8 sps:$4 sm:$0xff]  }
 0x167   : > { %v900_v34 = vmax.f32 %v837_v8, 0.0 }
 0x16b   : > { %2951 = vmatmul.mubr.msk.bf16.gmra.mxu0 %vm1301_vm1, %v924_v57 }
 0x16c   : > { %1645 = vmatmul.mubr.bf16.gmra.mxu1 %v3956_v60  ;;  %1575 = vmatprep.mubr.bf16.mxu0 %v3547_v0  ;;  %v897_v60 = vmax.f32 %v834_v2, 0.0 }
 0x16d   : > { %1652 = vmatprep.mubr.bf16.mxu1 %v3992_v35  ;;  %v842_v35 = vadd.f32 %v3176_v37, %v4047_v24  ;;  %v3391_v24 = vld [vmem:[%s4889_s5 + $0x60] ss:$8 sps:$4 sm:$0xff]   ;;  %v3417_v37 = vld [vmem:[%s4889_s5 + $0xe4] ss:$8 sps:$4 sm:$0xff]  }
 0x16e   : > { %v930_v46 = vpack.c.bf16 %v900_v34, %v897_v60  ;;  %v4347_v60 = vld [vmem:[%s4888_s4] sm:$0x7] }
 0x16f   : > { %v903_v62 = vmax.f32 %v842_v35, 0.0  ;;  %v4353_v35 = vrot.slane %v4347_v60, %v3894_v15 }
 0x171   : > { %v933_v22 = vpack.c.bf16 %v903_v62, %v903_v62 }
 0x173   : > { %2952 = vmatmul.mubr.msk.bf16.gmra.mxu0 %vm1301_vm1, %v4178_v33 }
 0x174   : > { %1653 = vmatmul.mubr.bf16.gmra.mxu1 %v3986_v29  ;;  %1585 = vmatprep.mubr.bf16.mxu0 %v3547_v0  ;;  %v3388_v29 = vld [vmem:[%s4889_s5 + $0x70] ss:$8 sps:$4 sm:$0xff]  }
 0x175   : > { %1660 = vmatprep.mubr.bf16.mxu1 %v4022_v4  ;;  %v3436_v4 = vld [vmem:[%s4889_s5 + $0x110] ss:$8 sps:$4 sm:$0xff]  }
 0x17b   : > { %2953 = vmatmul.mubr.msk.bf16.gmra.mxu0 %vm1301_vm1, %v930_v46 }
 0x17c   : > { %1661 = vmatmul.mubr.bf16.gmra.mxu1 %v4016_v59  ;;  %1595 = vmatprep.mubr.bf16.mxu0 %v3547_v0  ;;  %v3393_v59 = vld [vmem:[%s4889_s5 + $0x64] ss:$8 sps:$4 sm:$0xff]  }
 0x17d   : > { %1668 = vmatprep.mubr.bf16.mxu1 %v4049_v49  ;;  %v3396_v49 = vld [vmem:[%s4889_s5 + $0x54] ss:$8 sps:$4 sm:$0xff]  }
 0x183   : > { %2954 = vmatmul.mubr.msk.bf16.gmra.mxu0 %vm1301_vm1, %v933_v22 }
 0x184   : > { %1669 = vmatmul.mubr.bf16.gmra.mxu1 %v4042_v44  ;;  %3182 = vmatprep.mubr.msk.bf16.mxu0 %vm1301_vm1, %v4067_v13  ;;  %v3438_v44 = vld [vmem:[%s4889_s5 + $0x114] ss:$8 sps:$4 sm:$0xff]   ;;  %v3399_v13 = vld [vmem:[%s4889_s5 + $0x44] ss:$8 sps:$4 sm:$0xff]  }
 0x185   : > { %1676 = vmatprep.mubr.bf16.mxu1 %v4057_v56  ;;  %2317 = vmatprep.subr.bf16.mxu1 %v3438_v44  ;;  %v3394_v56 = vld [vmem:[%s4889_s5 + $0x50] ss:$8 sps:$4 sm:$0xff]  }
 0x186   : > { %2318 = vmatpush1.bf16.msra.mxu1 %v3436_v4 }
 0x187   : > { %2319 = vmatprep.subr.bf16.mxu1 %v3441_v25 }
 0x18a   : > { %2320 = vmatpush1.bf16.msra.mxu1 %v3439_v12 }
 0x18b   : > { %3183 = vmatmul.mubr.msk.bf16.vlgmr.msra.gmra.mxu0 %vm1301_vm1, %v4096_v63  ;;  %v3400_v63 = vld [vmem:[%s4889_s5 + $0x30] ss:$8 sps:$4 sm:$0xff]  }
 0x18c   : > { %1677 = vmatmul.mubr.bf16.gmra.mxu1 %v4069_v19  ;;  %3186 = vmatprep.mubr.msk.bf16.mxu0 %vm1301_vm1, %v4119_v28  ;;  %v3397_v19 = vld [vmem:[%s4889_s5 + $0x40] ss:$8 sps:$4 sm:$0xff]   ;;  %v3408_v28 = vld [vmem:[%s4889_s5 + $0x14] ss:$8 sps:$4 sm:$0xff]  }
 0x18d   : > { %1684 = vmatprep.mubr.bf16.mxu1 %v4081_v32  ;;  %2175 = vmatpush1.bf16.msra.mxu0 %v3388_v29  ;;  %v3402_v32 = vld [vmem:[%s4889_s5 + $0x34] ss:$8 sps:$4 sm:$0xff]  }
 0x18e   : > { %2176 = vmatprep.subr.bf16.mxu0 %v3393_v59 }
 0x191   : > { %2177 = vmatpush1.bf16.msra.mxu0 %v3391_v24 }
 0x192   : > { %2178 = vmatprep.subr.bf16.mxu0 %v3396_v49 }
 0x193   : > { %3187 = vmatmul.mubr.msk.bf16.gmra.mxu0 %vm1301_vm1, %v4136_v45  ;;  %v3423_v45 = vld [vmem:[%s4889_s5 + $0xc4] ss:$8 sps:$4 sm:$0xff]  }
 0x194   : > { %1685 = vmatmul.mubr.bf16.gmra.mxu1 %v4100_v54  ;;  %3190 = vmatprep.mubr.msk.bf16.mxu0 %vm1301_vm1, %v4154_v55  ;;  %v3405_v54 = vld [vmem:[%s4889_s5 + $0x24] ss:$8 sps:$4 sm:$0xff]  }
 0x195   : > { %1692 = vmatprep.mubr.bf16.mxu1 %v4108_v27  ;;  %2179 = vmatpush1.bf16.msra.mxu0 %v3394_v56  ;;  %v3403_v27 = vld [vmem:[%s4889_s5 + $0x20] ss:$8 sps:$4 sm:$0xff]  }
 0x196   : > { %2180 = vmatprep.subr.bf16.mxu0 %v3399_v13 }
 0x199   : > { %2181 = vmatpush1.bf16.msra.mxu0 %v3397_v19 }
 0x19a   : > { %2182 = vmatprep.subr.bf16.mxu0 %v3402_v32 }
 0x19b   : > { %3191 = vmatmul.mubr.msk.bf16.gmra.mxu0 %vm1301_vm1, %v4163_v48 }
 0x19c   : > { %1693 = vmatmul.mubr.bf16.gmra.mxu1 %v4121_v30  ;;  %3194 = vmatprep.mubr.msk.bf16.mxu0 %vm1301_vm1, %v924_v57  ;;  %v3411_v30 = vld [vmem:[%s4889_s5 + $0x4] ss:$8 sps:$4 sm:$0xff]  }
 0x19d   : > { %1700 = vmatprep.mubr.bf16.mxu1 %v4129_v31  ;;  %2183 = vmatpush1.bf16.msra.mxu0 %v3400_v63  ;;  %v3409_v31 = vld [vmem:[%s4889_s5] ss:$8 sps:$4 sm:$0xff]  }
 0x19e   : > { %2184 = vmatprep.subr.bf16.mxu0 %v3405_v54 }
 0x1a1   : > { %2185 = vmatpush1.bf16.msra.mxu0 %v3403_v27 }
 0x1a2   : > { %2186 = vmatprep.subr.bf16.mxu0 %v3408_v28 }
 0x1a3   : > { %3195 = vmatmul.mubr.msk.bf16.gmra.mxu0 %vm1301_vm1, %v4178_v33 }
 0x1a4   : > { %1701 = vmatmul.mubr.bf16.gmra.mxu1 %v4140_v50  ;;  %3198 = vmatprep.mubr.msk.bf16.mxu0 %vm1301_vm1, %v930_v46  ;;  %v3421_v50 = vld [vmem:[%s4889_s5 + $0xc0] ss:$8 sps:$4 sm:$0xff]   ;;  %v4357_v46 = vrot.slane %v4347_v60, %v3902_v17 }
 0x1a5   : > { %1708 = vmatprep.mubr.bf16.mxu1 %v4144_v16  ;;  %2187 = vmatpush1.bf16.msra.mxu0 %v3406_v39  ;;  %v3429_v16 = vld [vmem:[%s4889_s5 + $0xa4] ss:$8 sps:$4 sm:$0xff]  }
 0x1a6   : > { %2188 = vmatprep.subr.bf16.mxu0 %v3411_v30 }
 0x1a9   : > { %2189 = vmatpush1.bf16.msra.mxu0 %v3409_v31 }
 0x1aa   : > { %2190 = vmatprep.subr.bf16.mxu0 %v3414_v10 }
 0x1ab   : > { %3199 = vmatmul.mubr.msk.bf16.gmra.mxu0 %vm1301_vm1, %v933_v22 }
 0x1ac   : > { %1709 = vmatmul.mubr.bf16.gmra.mxu1 %v4156_v5 }
 0x1ad   : > { %2191 = vmatpush2.bf16.msra.mxu0 %v3412_v40  ;;  %2337 = vmatprep.mubr.bf16.mxu1 %v3547_v0 }
 0x1ae   : > { %2192 = vmatprep.subr.bf16.mxu0 %v3417_v37 }
 0x1b1   : > { %2193 = vmatpush2.bf16.msra.mxu0 %v3415_v21 }
 0x1b2   : > { %2194 = vmatprep.subr.bf16.mxu0 %v3420_v1 }
 0x1b5   : > { %2195 = vmatpush2.bf16.msra.mxu0 %v3418_v36 }
 0x1b6   : > { %2196 = vmatprep.subr.bf16.mxu0 %v3423_v45 }
 0x1b9   : > { %2197 = vmatpush2.bf16.msra.mxu0 %v3421_v50 }
 0x1ba   : > { %2198 = vmatprep.subr.bf16.mxu0 %v3426_v52 }
 0x1bd   : > { %2199 = vmatpush2.bf16.msra.mxu0 %v3424_v53 }
 0x1be   : > { %2200 = vmatprep.subr.bf16.mxu0 %v3429_v16 }
 0x1c1   : > { %2201 = vmatpush2.bf16.msra.mxu0 %v3427_v61 }
 0x1c2   : > { %2202 = vmatprep.subr.bf16.mxu0 %v3432_v51 }
 0x1c5   : > { %2203 = vmatpush2.bf16.msra.mxu0 %v3430_v47 }
 0x1c6   : > { %2204 = vmatprep.subr.bf16.mxu0 %v3435_v3 }
 0x1c9   : > { %2205 = vmatpush2.bf16.msra.mxu0 %v3433_v18 }
 0x1ca   : > { %2611 = vmatprep.subr.bf16.mxu0 %v3547_v0 }
 0x1d4   : > { %v1376_v55 = vpop.f32.mrf.mxu1 }
 0x1d5   : > { %v1377_v49 = vadd.f32 %v1376_v55, %v4353_v35 }
 0x1d6   : > { %v1378_v5 = vpop.f32.mrf.mxu1 }
 0x1d7   : > { %v1379_v4 = vadd.f32 %v1378_v5, %v4357_v46 }
 0x1d8   : > { %v1380_v6 = vpop.f32.mrf.mxu1 }
 0x1d9   : > { %v1381_v44 = vadd.f32 %v1380_v6, %v4353_v35 }
 0x1da   : > { %v1382_v7 = vpop.f32.mrf.mxu1 }
 0x1db   : > { %v1383_v13 = vadd.f32 %v1382_v7, %v4357_v46 }
 0x1dc   : > { %v1386_v48 = vpop.f32.mrf.mxu1 }
 0x1dd   : > { %v1387_v50 = vadd.f32 %v1386_v48, %v4353_v35 }
 0x1de   : > { %v1388_v42 = vpop.f32.mrf.mxu1 }
 0x1df   : > { %v1389_v36 = vadd.f32 %v1388_v42, %v4357_v46 }
 0x1e0   : > { %v1390_v58 = vpop.f32.mrf.mxu1 }
 0x1e1   : > { %v1391_v45 = vadd.f32 %v1390_v58, %v4353_v35 }
 0x1e2   : > { %v1392_v9 = vpop.f32.mrf.mxu1 }
 0x1e3   : > { %v1393_v16 = vadd.f32 %v1392_v9, %v4357_v46 }
 0x1e4   : > { %v4328_v11 = vpop.f32.mrf.mxu1 }
 0x1e6   : > { %v1398_v41 = vpop.f32.mrf.mxu1 }
 0x1e7   : > { %v1399_v9 = vadd.f32 %v1398_v41, %v4357_v46 }
 0x1e8   : > { %v1400_v43 = vpop.f32.mrf.mxu1 }
 0x1ea   : > { %v4330_v57 = vpop.f32.mrf.mxu1 }
 0x1ec   : > { %v4332_v20 = vpop.f32.mrf.mxu1 }
 0x1ee   : > { %v4334_v23 = vpop.f32.mrf.mxu1 }
 0x1f0   : > { %v4336_v38 = vpop.f32.mrf.mxu1 }
 0x1f2   : > { %v4338_v33 = vpop.f32.mrf.mxu1 }
 0x1f4   : > { %v4340_v2 = vpop.f32.mrf.mxu1 }
 0x1f6   : > { %v4342_v8 = vpop.f32.mrf.mxu1 }
 0x1f8   : > { %v4349_v34 = vpop.f32.mrf.mxu1 }
 0x1fa   : > { %v4359_v62 = vpop.f32.mrf.mxu1 }
 0x1fb   : > { %v1507_v22 = vpop.f32.mrf.mxu0 }
 0x1fc   : > { %v4361_v29 = vpop.f32.mrf.mxu1  ;;  %v1508_v54 = vadd.f32 %v1507_v22, %v1377_v49 }
 0x1fd   : > { %v1509_v59 = vpop.f32.mrf.mxu0 }
 0x1fe   : > { %v4365_v24 = vpop.f32.mrf.mxu1  ;;  %v1510_v19 = vadd.f32 %v1509_v59, %v1379_v4  ;;  %v1828_v21 = vmax.f32 %v1508_v54, 0.0  ;;  %v1401_v4 = vadd.f32 %v1400_v43, %v4353_v35 }
 0x1ff   : > { %v1511_v56 = vpop.f32.mrf.mxu0 }
 0x200   : > { %v1512_v32 = vadd.f32 %v1511_v56, %v1381_v44  ;;  %v4369_v63 = vpop.f32.mrf.mxu1  ;;  %v1829_v10 = vmax.f32 %v1510_v19, 0.0  ;;  %v1397_v56 = vadd.f32 %v4328_v11, %v4353_v35 }
 0x201   : > { %v1513_v27 = vpop.f32.mrf.mxu0 }
 0x202   : > { %v1514_v28 = vadd.f32 %v1513_v27, %v1383_v13  ;;  %v4371_v39 = vpop.f32.mrf.mxu1  ;;  %v1831_v30 = vmax.f32 %v1512_v32, 0.0  ;;  %v1403_v32 = vadd.f32 %v4330_v57, %v4357_v46  ;;  %v1409_v57 = vadd.f32 %v4334_v23, %v4357_v46 }
 0x203   : > { %v1517_v31 = vpop.f32.mrf.mxu0 }
 0x204   : > { %v1832_v40 = vmax.f32 %v1514_v28, 0.0  ;;  %v4373_v37 = vpop.f32.mrf.mxu1  ;;  %v1885_v52 = vpack.c.bf16 %v1831_v30, %v1828_v21  ;;  %v1518_v3 = vadd.f32 %v1517_v31, %v1387_v50 }
 0x205   : > { %v1519_v1 = vpop.f32.mrf.mxu0 }
 0x206   : > { %v4377_v12 = vpop.f32.mrf.mxu1  ;;  %v1886_v25 = vpack.c.bf16 %v1832_v40, %v1829_v10  ;;  %v1520_v61 = vadd.f32 %v1519_v1, %v1389_v36  ;;  %v1834_v22 = vmax.f32 %v1518_v3, 0.0 }
 0x207   : > { %v1521_v53 = vpop.f32.mrf.mxu0 }
 0x208   : > { %v1522_v51 = vadd.f32 %v1521_v53, %v1391_v45  ;;  %v4381_v47 = vpop.f32.mrf.mxu1  ;;  %2206 = vmatprep.mubr.bf16.mxu0 %v1886_v25  ;;  %v1835_v42 = vmax.f32 %v1520_v61, 0.0  ;;  %v1411_v25 = vadd.f32 %v4336_v38, %v4353_v35  ;;  %v1407_v53 = vadd.f32 %v4332_v20, %v4353_v35 }
 0x209   : > { %v1523_v18 = vpop.f32.mrf.mxu0  ;;  %2207 = vmatmul.mubr.bf16.vlgmr.msra.gmra.mxu0 %v1885_v52 }
 0x20a   : > { %v1524_v55 = vadd.f32 %v1523_v18, %v1393_v16  ;;  %v4383_v5 = vpop.f32.mrf.mxu1  ;;  %v1837_v6 = vmax.f32 %v1522_v51, 0.0  ;;  %v1413_v51 = vadd.f32 %v4338_v33, %v4357_v46  ;;  %v1419_v33 = vadd.f32 %v4342_v8, %v4357_v46 }
 0x20b   : > { %v1527_v7 = vpop.f32.mrf.mxu0 }
 0x20c   : > { %v1838_v58 = vmax.f32 %v1524_v55, 0.0  ;;  %v4385_v48 = vpop.f32.mrf.mxu1  ;;  %v1888_v13 = vpack.c.bf16 %v1837_v6, %v1834_v22  ;;  %v1528_v30 = vadd.f32 %v1527_v7, %v1397_v56 }
 0x20d   : > { %v1529_v59 = vpop.f32.mrf.mxu0 }
 0x20e   : > { %v4389_v44 = vpop.f32.mrf.mxu1  ;;  %v1889_v49 = vpack.c.bf16 %v1838_v58, %v1835_v42  ;;  %v1530_v54 = vadd.f32 %v1529_v59, %v1399_v9  ;;  %v1840_v36 = vmax.f32 %v1528_v30, 0.0 }
 0x20f   : > { %v1531_v19 = vpop.f32.mrf.mxu0 }
 0x210   : > { %v1532_v27 = vadd.f32 %v1531_v19, %v1401_v4  ;;  %v4395_v28 = vpop.f32.mrf.mxu1  ;;  %2216 = vmatprep.mubr.bf16.mxu0 %v1889_v49  ;;  %v1841_v21 = vmax.f32 %v1530_v54, 0.0  ;;  %v1421_v49 = vadd.f32 %v4349_v34, %v4353_v35  ;;  %v1417_v19 = vadd.f32 %v4340_v2, %v4353_v35 }
 0x211   : > { %v1533_v41 = vpop.f32.mrf.mxu0  ;;  %2217 = vmatmul.mubr.bf16.gmra.mxu0 %v1888_v13 }
 0x212   : > { %v1534_v43 = vadd.f32 %v1533_v41, %v1403_v32  ;;  %v4397_v31 = vpop.f32.mrf.mxu1  ;;  %v1843_v10 = vmax.f32 %v1532_v27, 0.0  ;;  %v1423_v27 = vadd.f32 %v4359_v62, %v4357_v46  ;;  %v1429_v62 = vadd.f32 %v4365_v24, %v4357_v46 }
 0x213   : > { %v1537_v40 = vpop.f32.mrf.mxu0 }
 0x214   : > { %v1844_v11 = vmax.f32 %v1534_v43, 0.0  ;;  %v4399_v1 = vpop.f32.mrf.mxu1  ;;  %v1891_v16 = vpack.c.bf16 %v1843_v10, %v1840_v36  ;;  %v1538_v23 = vadd.f32 %v1537_v40, %v1407_v53 }
 0x215   : > { %v1539_v45 = vpop.f32.mrf.mxu0 }
 0x216   : > { %v4405_v50 = vpop.f32.mrf.mxu1  ;;  %v1892_v52 = vpack.c.bf16 %v1844_v11, %v1841_v21  ;;  %v1540_v3 = vadd.f32 %v1539_v45, %v1409_v57  ;;  %v1846_v9 = vmax.f32 %v1538_v23, 0.0 }
 0x217   : > { %v1541_v61 = vpop.f32.mrf.mxu0 }
 0x218   : > { %v1542_v18 = vadd.f32 %v1541_v61, %v1411_v25  ;;  %v4411_v55 = vpop.f32.mrf.mxu1  ;;  %2226 = vmatprep.mubr.bf16.mxu0 %v1892_v52  ;;  %v1847_v22 = vmax.f32 %v1540_v3, 0.0  ;;  %v1431_v52 = vadd.f32 %v4369_v63, %v4353_v35  ;;  %v1427_v61 = vadd.f32 %v4361_v29, %v4353_v35 }
 0x219   : > { %v1543_v6 = vpop.f32.mrf.mxu0  ;;  %2227 = vmatmul.mubr.bf16.gmra.mxu0 %v1891_v16 }
 0x21a   : > { %v1544_v38 = vadd.f32 %v1543_v6, %v1413_v51  ;;  %v4413_v7 = vpop.f32.mrf.mxu1  ;;  %v1849_v42 = vmax.f32 %v1542_v18, 0.0  ;;  %v1433_v18 = vadd.f32 %v4371_v39, %v4357_v46  ;;  %v1439_v39 = vadd.f32 %v4377_v12, %v4357_v46 }
 0x21b   : > { %v1547_v58 = vpop.f32.mrf.mxu0 }
 0x21c   : > { %v1850_v20 = vmax.f32 %v1544_v38, 0.0  ;;  %v4415_v59 = vpop.f32.mrf.mxu1  ;;  %v1894_v32 = vpack.c.bf16 %v1849_v42, %v1846_v9  ;;  %v1548_v10 = vadd.f32 %v1547_v58, %v1417_v19 }
 0x21d   : > { %v1549_v4 = vpop.f32.mrf.mxu0 }
 0x21e   : > { %v4421_v56 = vpop.f32.mrf.mxu1  ;;  %v1895_v13 = vpack.c.bf16 %v1850_v20, %v1847_v22  ;;  %v1550_v30 = vadd.f32 %v1549_v4, %v1419_v33  ;;  %v1852_v2 = vmax.f32 %v1548_v10, 0.0 }
 0x21f   : > { %v1551_v54 = vpop.f32.mrf.mxu0 }
 0x220   : > { %v1552_v41 = vadd.f32 %v1551_v54, %v1421_v49  ;;  %v1470_v43 = vpop.f32.mrf.mxu1  ;;  %2236 = vmatprep.mubr.bf16.mxu0 %v1895_v13  ;;  %v1853_v36 = vmax.f32 %v1550_v30, 0.0  ;;  %v1441_v13 = vadd.f32 %v4381_v47, %v4353_v35  ;;  %v1437_v54 = vadd.f32 %v4373_v37, %v4353_v35 }
 0x221   : > { %v1553_v8 = vpop.f32.mrf.mxu0  ;;  %2237 = vmatmul.mubr.bf16.gmra.mxu0 %v1894_v32 }
 0x222   : > { %v1554_v40 = vadd.f32 %v1553_v8, %v1423_v27  ;;  %v1471_v34 = vpop.f32.mrf.mxu1  ;;  %v1855_v21 = vmax.f32 %v1552_v41, 0.0  ;;  %v1443_v41 = vadd.f32 %v4383_v5, %v4357_v46  ;;  %v1449_v5 = vadd.f32 %v4389_v44, %v4357_v46 }
 0x223   : > { %v1557_v11 = vpop.f32.mrf.mxu0 }
 0x224   : > { %v1856_v45 = vmax.f32 %v1554_v40, 0.0  ;;  %v4427_v57 = vpop.f32.mrf.mxu1  ;;  %v1897_v51 = vpack.c.bf16 %v1855_v21, %v1852_v2  ;;  %v1558_v24 = vadd.f32 %v1557_v11, %v1427_v61  ;;  %v1447_v61 = vadd.f32 %v4385_v48, %v4353_v35 }
 0x225   : > { %v1559_v25 = vpop.f32.mrf.mxu0 }
 0x226   : > { %v4433_v53 = vpop.f32.mrf.mxu1  ;;  %v1898_v16 = vpack.c.bf16 %v1856_v45, %v1853_v36  ;;  %v1560_v23 = vadd.f32 %v1559_v25, %v1429_v62  ;;  %v1858_v33 = vmax.f32 %v1558_v24, 0.0  ;;  %v1451_v62 = vadd.f32 %v4395_v28, %v4353_v35 }
 0x227   : > { %v1561_v3 = vpop.f32.mrf.mxu0 }
 0x228   : > { %v1562_v6 = vadd.f32 %v1561_v3, %v1431_v52  ;;  %v4439_v38 = vpop.f32.mrf.mxu1  ;;  %2246 = vmatprep.mubr.bf16.mxu0 %v1898_v16  ;;  %v1859_v9 = vmax.f32 %v1560_v23, 0.0 }
 0x229   : > { %v1563_v42 = vpop.f32.mrf.mxu0  ;;  %2247 = vmatmul.mubr.bf16.gmra.mxu0 %v1897_v51 }
 0x22a   : > { %v1564_v63 = vadd.f32 %v1563_v42, %v1433_v18  ;;  %v4441_v58 = vpop.f32.mrf.mxu1  ;;  %v1861_v22 = vmax.f32 %v1562_v6, 0.0  ;;  %v1453_v18 = vadd.f32 %v4397_v31, %v4357_v46  ;;  %v1459_v31 = vadd.f32 %v4405_v50, %v4357_v46 }
 0x22b   : > { %v1567_v20 = vpop.f32.mrf.mxu0 }
 0x22c   : > { %v1862_v29 = vmax.f32 %v1564_v63, 0.0  ;;  %v4443_v4 = vpop.f32.mrf.mxu1  ;;  %v1900_v27 = vpack.c.bf16 %v1861_v22, %v1858_v33  ;;  %v1568_v12 = vadd.f32 %v1567_v20, %v1437_v54  ;;  %v1457_v54 = vadd.f32 %v4399_v1, %v4353_v35 }
 0x22d   : > { %v1569_v49 = vpop.f32.mrf.mxu0  ;;  %v1469_v1 = vadd.f32 %v4421_v56, %v4357_v46  ;;  %v3072_v56 = vadd.f32 %v4433_v53, %v4427_v57 }
 0x22e   : > { %v4449_v19 = vpop.f32.mrf.mxu1  ;;  %v1901_v32 = vpack.c.bf16 %v1862_v29, %v1859_v9  ;;  %v1570_v43 = vadd.f32 %v1569_v49, %v1439_v39  ;;  %v1864_v2 = vmax.f32 %v1568_v12, 0.0  ;;  %v1461_v39 = vadd.f32 %v4411_v55, %v4353_v35 }
 0x22f   : > { %v1571_v30 = vpop.f32.mrf.mxu0 }
 0x230   : > { %v1572_v10 = vadd.f32 %v1571_v30, %v1441_v13  ;;  %v4455_v8 = vpop.f32.mrf.mxu1  ;;  %2256 = vmatprep.mubr.bf16.mxu0 %v1901_v32  ;;  %v1865_v36 = vmax.f32 %v1570_v43, 0.0 }
 0x231   : > { %v1573_v40 = vpop.f32.mrf.mxu0  ;;  %2257 = vmatmul.mubr.bf16.gmra.mxu0 %v1900_v27 }
 0x232   : > { %v1574_v47 = vadd.f32 %v1573_v40, %v1443_v41  ;;  %v4457_v34 = vpop.f32.mrf.mxu1  ;;  %v1867_v21 = vmax.f32 %v1572_v10, 0.0  ;;  %v1463_v41 = vadd.f32 %v4413_v7, %v4357_v46  ;;  %v1467_v7 = vadd.f32 %v4415_v59, %v4353_v35 }
 0x233   : > { %v1577_v11 = vpop.f32.mrf.mxu0  ;;  %v4508_v59 = vrot.slane %v4347_v60, %v413_v26  ;;  %v3081_v14 = vadd.f32 %v4457_v34, %v4455_v8 }
 0x234   : > { %v1868_v37 = vmax.f32 %v1574_v47, 0.0  ;;  %v4459_v45 = vpop.f32.mrf.mxu1  ;;  %v1903_v51 = vpack.c.bf16 %v1867_v21, %v1864_v2  ;;  %v1578_v44 = vadd.f32 %v1577_v11, %v1447_v61 }
 0x235   : > { %v1579_v25 = vpop.f32.mrf.mxu0 }
 0x236   : > { %v4465_v52 = vpop.f32.mrf.mxu1  ;;  %v1904_v16 = vpack.c.bf16 %v1868_v37, %v1865_v36  ;;  %v1580_v23 = vadd.f32 %v1579_v25, %v1449_v5  ;;  %v1870_v33 = vmax.f32 %v1578_v44, 0.0 }
 0x237   : > { %v1581_v3 = vpop.f32.mrf.mxu0 }
 0x238   : > { %v1582_v6 = vadd.f32 %v1581_v3, %v1451_v62  ;;  %v4471_v24 = vpop.f32.mrf.mxu1  ;;  %2266 = vmatprep.mubr.bf16.mxu0 %v1904_v16  ;;  %v1871_v9 = vmax.f32 %v1580_v23, 0.0 }
 0x239   : > { %v1583_v42 = vpop.f32.mrf.mxu0  ;;  %2267 = vmatmul.mubr.bf16.gmra.mxu0 %v1903_v51 }
 0x23a   : > { %v1584_v28 = vadd.f32 %v1583_v42, %v1453_v18  ;;  %v4473_v63 = vpop.f32.mrf.mxu1  ;;  %v1873_v22 = vmax.f32 %v1582_v6, 0.0 }
 0x23b   : > { %v1587_v20 = vpop.f32.mrf.mxu0 }
 0x23c   : > { %v1874_v48 = vmax.f32 %v1584_v28, 0.0  ;;  %v4475_v29 = vpop.f32.mrf.mxu1  ;;  %v1906_v27 = vpack.c.bf16 %v1873_v22, %v1870_v33  ;;  %v1588_v50 = vadd.f32 %v1587_v20, %v1457_v54  ;;  %v3075_v22 = vadd.f32 %v4441_v58, %v4439_v38 }
 0x23d   : > { %v1589_v49 = vpop.f32.mrf.mxu0  ;;  %v3078_v38 = vadd.f32 %v4449_v19, %v4443_v4  ;;  %v3087_v4 = vadd.f32 %v4473_v63, %v4471_v24 }
 0x23e   : > { %v1907_v13 = vpack.c.bf16 %v1874_v48, %v1871_v9  ;;  %v4481_v32 = vpop.f32.mrf.mxu1  ;;  %v1590_v43 = vadd.f32 %v1589_v49, %v1459_v31  ;;  %v1876_v25 = vmax.f32 %v1588_v50, 0.0  ;;  %v1639_v48 = vadd.f32 %v3072_v56, %v4508_v59 }
 0x23f   : > { %v1591_v30 = vpop.f32.mrf.mxu0  ;;  %v1642_v49 = vadd.f32 %v3075_v22, %v4508_v59  ;;  %v1647_v34 = vadd.f32 %v3078_v38, %v4508_v59  ;;  %v1658_v63 = vadd.f32 %v3087_v4, %v4508_v59  ;;  %v3444_v38 = vld [vmem:[#allocation2 + $0x28] sm:$0xff]  }
 0x240   : > { %v1592_v10 = vadd.f32 %v1591_v30, %v1461_v39  ;;  %v4487_v12 = vpop.f32.mrf.mxu1  ;;  %2276 = vmatprep.mubr.bf16.mxu0 %v1907_v13  ;;  %v1877_v36 = vmax.f32 %v1590_v43, 0.0 }
 0x241   : > { %v1593_v40 = vpop.f32.mrf.mxu0  ;;  %2277 = vmatmul.mubr.bf16.gmra.mxu0 %v1906_v27  ;;  %v1650_v27 = vadd.f32 %v3081_v14, %v4508_v59 }
 0x242   : > { %v1594_v55 = vadd.f32 %v1593_v40, %v1463_v41  ;;  %v4489_v47 = vpop.f32.mrf.mxu1  ;;  %v1879_v21 = vmax.f32 %v1592_v10, 0.0 }
 0x243   : > { %v1597_v11 = vpop.f32.mrf.mxu0 }
 0x244   : > { %v1880_v37 = vmax.f32 %v1594_v55, 0.0  ;;  %v4493_v2 = vpop.f32.mrf.mxu1  ;;  %v1909_v51 = vpack.c.bf16 %v1879_v21, %v1876_v25  ;;  %v1598_v3 = vadd.f32 %v1597_v11, %v1467_v7  ;;  %v3442_v21 = vld [vmem:[#allocation2 + $0x38] sm:$0xff]  }
 0x245   : > { %v1599_v5 = vpop.f32.mrf.mxu0  ;;  %2612 = vmatpush1.bf16.msra.mxu0 %v3442_v21 }
 0x246   : > { %v1910_v62 = vpack.c.bf16 %v1880_v37, %v1877_v36  ;;  %v1600_v16 = vadd.f32 %v1599_v5, %v1469_v1  ;;  %v4497_v61 = vpop.f32.mrf.mxu1  ;;  %v1882_v42 = vmax.f32 %v1598_v3, 0.0  ;;  %v3084_v1 = vadd.f32 %v4465_v52, %v4459_v45  ;;  %2613 = vmatprep.subr.bf16.mxu0 %v3547_v0 }
 0x247   : > { %v1601_v18 = vpop.f32.mrf.mxu0  ;;  %v3093_v52 = vadd.f32 %v4489_v47, %v4487_v12 }
 0x248   : > { %v1883_v23 = vmax.f32 %v1600_v16, 0.0  ;;  %v4499_v6 = vpop.f32.mrf.mxu1  ;;  %2286 = vmatprep.mubr.bf16.mxu0 %v1910_v62  ;;  %v1912_v53 = vpack.c.bf16 %v1882_v42, %v1882_v42  ;;  %v1655_v16 = vadd.f32 %v3084_v1, %v4508_v59 }
 0x249   : > { %v1602_v46 = vpop.f32.mrf.mxu0  ;;  %2287 = vmatmul.mubr.bf16.gmra.mxu0 %v1909_v51  ;;  %v1666_v47 = vadd.f32 %v3093_v52, %v4508_v59 }
 0x24a   : > { %v1913_v44 = vpack.c.bf16 %v1883_v23, %v1883_v23  ;;  %v4503_v35 = vpop.f32.mrf.mxu1  ;;  %v3443_v46 = vld [vmem:[#allocation2 + $0x30] sm:$0xff]  }
 0x24b   : > { %v3184_v28 = vpop.f32.mrf.mxu0  ;;  %2614 = vmatpush1.bf16.msra.mxu0 %v3443_v46 }
 0x24c   : > { %v4512_v20 = vpop.f32.mrf.mxu1  ;;  %2296 = vmatprep.mubr.bf16.mxu0 %v1913_v44  ;;  %v1759_v19 = vadd.f32 %v3184_v28, %v1647_v34  ;;  %v3090_v44 = vadd.f32 %v4481_v32, %v4475_v29  ;;  %2615 = vmatprep.subr.bf16.mxu0 %v3547_v0  ;;  %v3099_v32 = vadd.f32 %v4503_v35, %v4499_v6 }
 0x24d   : > { %v1750_v9 = vpop.f32.mrf.mxu0 }
 0x24e   : > { %v4515_v57 = vpop.f32.mrf.mxu1  ;;  %v1751_v26 = vadd.f32 %v1750_v9, %v1639_v48  ;;  %v1836_v24 = vmax.f32 %v1759_v19, 0.0  ;;  %v1674_v35 = vadd.f32 %v3099_v32, %v4508_v59 }
 0x24f   : > { %v3185_v33 = vpop.f32.mrf.mxu0  ;;  %2616 = vmatpush1.bf16.msra.mxu0 %v3444_v38  ;;  %v3102_v1 = vadd.f32 %v4515_v57, %v4512_v20  ;;  %v3446_v20 = vld [vmem:[#allocation2 + $0x18] sm:$0xff]  }
 0x250   : > { %v4519_v60 = vpop.f32.mrf.mxu1  ;;  %v1830_v54 = vmax.f32 %v1751_v26, 0.0  ;;  %v1762_v43 = vadd.f32 %v3185_v33, %v1650_v27  ;;  %2617 = vmatprep.subr.bf16.mxu0 %v3547_v0 }
 0x251   : > { %v1753_v31 = vpop.f32.mrf.mxu0  ;;  %2297 = vmatmul.mubr.bf16.gmra.mxu0 %v1912_v53  ;;  %v1663_v53 = vadd.f32 %v3090_v44, %v4508_v59 }
 0x252   : > { %v1754_v58 = vadd.f32 %v1753_v31, %v1642_v49  ;;  %v4524_v39 = vpop.f32.mrf.mxu1  ;;  %v1839_v36 = vmax.f32 %v1762_v43, 0.0 }
 0x253   : > { %v3188_v13 = vpop.f32.mrf.mxu0 }
 0x254   : > { %v1833_v30 = vmax.f32 %v1754_v58, 0.0  ;;  %v4527_v41 = vpop.f32.mrf.mxu1  ;;  %v1890_v62 = vpack.c.bf16 %v1839_v36, %v1836_v24  ;;  %v1775_v49 = vadd.f32 %v3188_v13, %v1663_v53 }
 0x255   : > { %v1766_v8 = vpop.f32.mrf.mxu0 }
 0x256   : > { %v1887_v10 = vpack.c.bf16 %v1833_v30, %v1830_v54  ;;  %v4530_v50 = vpop.f32.mrf.mxu1  ;;  %v1767_v18 = vadd.f32 %v1766_v8, %v1655_v16  ;;  %v3096_v54 = vadd.f32 %v4497_v61, %v4493_v2  ;;  %v1848_v6 = vmax.f32 %v1775_v49, 0.0 }
 0x257   : > { %v3189_v40 = vpop.f32.mrf.mxu0  ;;  %v3105_v61 = vadd.f32 %v4524_v39, %v4519_v60  ;;  %v1679_v60 = vadd.f32 %v3102_v1, %v4508_v59  ;;  %v3108_v57 = vadd.f32 %v4530_v50, %v4527_v41  ;;  %v3447_v41 = vld [vmem:[#allocation2 + $0x10] sm:$0xff]  }
 0x258   : > { %v4534_v55 = vpop.f32.mrf.mxu1  ;;  %3001 = vmatmul.mubr.msk.bf16.vlgmr.msra.gmra.mxu1 %vm2143_vm2, %v1887_v10  ;;  %v1842_v12 = vmax.f32 %v1767_v18, 0.0  ;;  %v1778_v33 = vadd.f32 %v3189_v40, %v1666_v47  ;;  %v1671_v10 = vadd.f32 %v3096_v54, %v4508_v59  ;;  %v3449_v54 = vld [vmem:[#allocation2] sm:$0xff]  }
 0x259   : > { %v1769_v11 = vpop.f32.mrf.mxu0  ;;  %2347 = vmatprep.mubr.bf16.mxu1 %v3547_v0 }
 0x25a   : > { %v4540_v37 = vpop.f32.mrf.mxu1  ;;  %v1770_v51 = vadd.f32 %v1769_v11, %v1658_v63  ;;  %v1851_v27 = vmax.f32 %v1778_v33, 0.0  ;;  %v3445_v11 = vld [vmem:[#allocation2 + $0x20] sm:$0xff]  }
 0x25b   : > { %v4542_v7 = vpop.f32.mrf.mxu0  ;;  %2618 = vmatpush1.bf16.msra.mxu0 %v3445_v11  ;;  %v3111_v16 = vadd.f32 %v4540_v37, %v4534_v55  ;;  %v1687_v37 = vadd.f32 %v3108_v57, %v4508_v59 }
 0x25c   : > { %v4546_v25 = vpop.f32.mrf.mxu1  ;;  %v1845_v42 = vmax.f32 %v1770_v51, 0.0  ;;  %v1896_v43 = vpack.c.bf16 %v1851_v27, %v1848_v6  ;;  %2619 = vmatprep.subr.bf16.mxu0 %v3547_v0  ;;  %v1791_v51 = vadd.f32 %v4542_v7, %v1679_v60 }
 0x25d   : > { %v1782_v5 = vpop.f32.mrf.mxu0 }
 0x25e   : > { %v4549_v3 = vpop.f32.mrf.mxu1  ;;  %v1893_v14 = vpack.c.bf16 %v1845_v42, %v1842_v12  ;;  %v1783_v19 = vadd.f32 %v1782_v5, %v1671_v10  ;;  %v1860_v18 = vmax.f32 %v1791_v51, 0.0 }
 0x25f   : > { %v3193_v45 = vpop.f32.mrf.mxu0  ;;  %2620 = vmatpush1.bf16.msra.mxu0 %v3446_v20 }
 0x260   : > { %v4553_v23 = vpop.f32.mrf.mxu1  ;;  %3002 = vmatmul.mubr.msk.bf16.gmra.mxu1 %vm2143_vm2, %v1890_v62  ;;  %v1854_v63 = vmax.f32 %v1783_v19, 0.0  ;;  %v1682_v62 = vadd.f32 %v3105_v61, %v4508_v59  ;;  %2621 = vmatprep.subr.bf16.mxu0 %v3547_v0 }
 0x261   : > { %v1785_v56 = vpop.f32.mrf.mxu0  ;;  %2357 = vmatprep.mubr.bf16.mxu1 %v3547_v0 }
 0x262   : > { %v4559_v28 = vpop.f32.mrf.mxu1  ;;  %v1786_v40 = vadd.f32 %v1785_v56, %v1674_v35  ;;  %v1794_v39 = vadd.f32 %v3193_v45, %v1682_v62  ;;  %v1690_v45 = vadd.f32 %v3111_v16, %v4508_v59  ;;  %v3114_v56 = vadd.f32 %v4549_v3, %v4546_v25  ;;  %v3450_v35 = vld [vmem:[#allocation2 + $0x48] sm:$0xff]  }
 0x263   : > { %v4561_v22 = vpop.f32.mrf.mxu0  ;;  %v3117_v55 = vadd.f32 %v4559_v28, %v4553_v23  ;;  %2622 = vmatpush1.bf16.msra.mxu0 %v3447_v41 }
 0x264   : > { %v4565_v9 = vpop.f32.mrf.mxu1  ;;  %v1857_v36 = vmax.f32 %v1786_v40, 0.0  ;;  %v1863_v52 = vmax.f32 %v1794_v39, 0.0  ;;  %2623 = vmatprep.subr.bf16.mxu0 %v3547_v0  ;;  %v1695_v23 = vadd.f32 %v3114_v56, %v4508_v59 }
 0x265   : > { %v1798_v48 = vpop.f32.mrf.mxu0  ;;  %v1698_v50 = vadd.f32 %v3117_v55, %v4508_v59 }
 0x266   : > { %v4568_v26 = vpop.f32.mrf.mxu1  ;;  %v1899_v5 = vpack.c.bf16 %v1857_v36, %v1854_v63  ;;  %v1902_v46 = vpack.c.bf16 %v1863_v52, %v1860_v18  ;;  %v1799_v44 = vadd.f32 %v1798_v48, %v1687_v37  ;;  %v1807_v25 = vadd.f32 %v4561_v22, %v1695_v23  ;;  %v3448_v48 = vld [vmem:[#allocation2 + $0x8] sm:$0xff]  }
 0x267   : > { %v4570_v29 = vpop.f32.mrf.mxu0  ;;  %v3120_v53 = vadd.f32 %v4568_v26, %v4565_v9  ;;  %2624 = vmatpush1.bf16.msra.mxu0 %v3448_v48 }
 0x268   : > { %v4574_v31 = vpop.f32.mrf.mxu1  ;;  %3003 = vmatmul.mubr.msk.bf16.gmra.mxu1 %vm2143_vm2, %v1893_v14  ;;  %v1866_v28 = vmax.f32 %v1799_v44, 0.0  ;;  %v1810_v12 = vadd.f32 %v4570_v29, %v1698_v50  ;;  %2625 = vmatprep.subr.bf16.mxu0 %v3547_v0  ;;  %v1872_v32 = vmax.f32 %v1807_v25, 0.0 }
 0x269   : > { %v1801_v58 = vpop.f32.mrf.mxu0  ;;  %2367 = vmatprep.mubr.bf16.mxu1 %v3547_v0  ;;  %v1703_v22 = vadd.f32 %v3120_v53, %v4508_v59 }
 0x26a   : > { %v3122_v30 = vpop.f32.mrf.mxu1  ;;  %v1802_v7 = vadd.f32 %v1801_v58, %v1690_v45  ;;  %v1875_v33 = vmax.f32 %v1810_v12, 0.0  ;;  %v1951_v12 = vld [vmem:[%s4890_s6] sm:$0x3] }
 0x26b   : > { %v4580_v8 = vpop.f32.mrf.mxu0  ;;  %v3123_v3 = vadd.f32 %v3122_v30, %v4574_v31  ;;  %2626 = vmatpush1.bf16.msra.mxu0 %v3449_v54  ;;  %v4702_v25 = vrot.slane %v1951_v12, %v3894_v15  ;;  %v4705_v48 = vrot.slane %v1951_v12, %v3902_v17 }
 0x26c   : > { %v4584_v13 = vpop.f32.mrf.mxu1  ;;  %v1869_v42 = vmax.f32 %v1802_v7, 0.0  ;;  %v1908_v49 = vpack.c.bf16 %v1875_v33, %v1872_v32  ;;  %2639 = vmatprep.subr.bf16.mxu0 %v3547_v0 }
 0x26d   : > { %v4586_v34 = vpop.f32.mrf.mxu0  ;;  %v1706_v29 = vadd.f32 %v3123_v3, %v4508_v59 }
 0x26e   : > { %v3125_v4 = vpop.f32.mrf.mxu1  ;;  %v1905_v47 = vpack.c.bf16 %v1869_v42, %v1866_v28  ;;  %v1815_v58 = vadd.f32 %v4586_v34, %v1703_v22 }
 0x26f   : > { %v3201_v2 = vpop.f32.mrf.mxu0  ;;  %v3126_v31 = vadd.f32 %v3125_v4, %v4584_v13  ;;  %2640 = vmatpush2.bf16.msra.mxu0 %v3450_v35 }
 0x270   : > { %v3127_v21 = vpop.f32.mrf.mxu1  ;;  %3004 = vmatmul.mubr.msk.bf16.gmra.mxu1 %vm2143_vm2, %v1896_v43  ;;  %v1878_v27 = vmax.f32 %v1815_v58, 0.0  ;;  %2641 = vmatprep.subr.bf16.mxu0 %v3547_v0 }
 0x271   : > { %2377 = vmatprep.mubr.bf16.mxu1 %v3547_v0  ;;  %v1817_v14 = vpop.f32.mrf.mxu0  ;;  %v1711_v9 = vadd.f32 %v3126_v31, %v4508_v59  ;;  %v3451_v59 = vld [vmem:[#allocation2 + $0x40] sm:$0xff]  }
 0x272   : > { %v3128_v24 = vpop.f32.mrf.mxu1  ;;  %v1818_v38 = vadd.f32 %v1817_v14, %v1706_v29 }
 0x273   : > { %v1823_v30 = vadd.f32 %v4580_v8, %v1711_v9  ;;  %2642 = vmatpush2.bf16.msra.mxu0 %v3451_v59 }
 0x274   : > { %v1881_v26 = vmax.f32 %v1818_v38, 0.0 }
 0x275   : > { %v1884_v13 = vmax.f32 %v1823_v30, 0.0 }
 0x276   : > { %v1911_v6 = vpack.c.bf16 %v1881_v26, %v1878_v27 }
 0x277   : > { %v1914_v34 = vpack.c.bf16 %v1884_v13, %v1884_v13 }
 0x278   : > { %3005 = vmatmul.mubr.msk.bf16.gmra.mxu1 %vm2143_vm2, %v1899_v5 }
 0x279   : > { %2387 = vmatprep.mubr.bf16.mxu1 %v3547_v0 }
 0x280   : > { %3006 = vmatmul.mubr.msk.bf16.gmra.mxu1 %vm2143_vm2, %v1902_v46 }
 0x281   : > { %2397 = vmatprep.mubr.bf16.mxu1 %v3547_v0 }
 0x288   : > { %3007 = vmatmul.mubr.msk.bf16.gmra.mxu1 %vm2143_vm2, %v1905_v47 }
 0x289   : > { %2407 = vmatprep.mubr.bf16.mxu1 %v3547_v0 }
 0x290   : > { %3008 = vmatmul.mubr.msk.bf16.gmra.mxu1 %vm2143_vm2, %v1908_v49 }
 0x291   : > { %2417 = vmatprep.mubr.bf16.mxu1 %v3547_v0 }
 0x298   : > { %3009 = vmatmul.mubr.msk.bf16.gmra.mxu1 %vm2143_vm2, %v1911_v6 }
 0x299   : > { %2427 = vmatprep.mubr.bf16.mxu1 %v3547_v0 }
 0x2a0   : > { %3010 = vmatmul.mubr.msk.bf16.gmra.mxu1 %vm2143_vm2, %v1914_v34 }
 0x2c9   : > { %v2208_v43 = vpop.f32.mrf.mxu0 }
 0x2ca   : > { %v2209_v14 = vadd.f32 %v2208_v43, %v4702_v25 }
 0x2cb   : > { %v2210_v10 = vpop.f32.mrf.mxu0 }
 0x2cc   : > { %v2211_v29 = vadd.f32 %v2210_v10, %v4705_v48 }
 0x2cd   : > { %v2212_v40 = vpop.f32.mrf.mxu0 }
 0x2ce   : > { %v2213_v49 = vadd.f32 %v2212_v40, %v4702_v25 }
 0x2cf   : > { %v2214_v4 = vpop.f32.mrf.mxu0 }
 0x2d0   : > { %v2215_v38 = vadd.f32 %v2214_v4, %v4705_v48 }
 0x2d1   : > { %v2218_v8 = vpop.f32.mrf.mxu0 }
 0x2d2   : > { %v2219_v30 = vadd.f32 %v2218_v8, %v4702_v25 }
 0x2d3   : > { %v2220_v2 = vpop.f32.mrf.mxu0 }
 0x2d4   : > { %v2221_v59 = vadd.f32 %v2220_v2, %v4705_v48 }
 0x2d5   : > { %v2222_v61 = vpop.f32.mrf.mxu0 }
 0x2d6   : > { %v2223_v43 = vadd.f32 %v2222_v61, %v4702_v25 }
 0x2d7   : > { %v2224_v19 = vpop.f32.mrf.mxu0 }
 0x2d8   : > { %v2225_v12 = vadd.f32 %v2224_v19, %v4705_v48 }
 0x2d9   : > { %v4638_v21 = vpop.f32.mrf.mxu0 }
 0x2da   : > { %v2229_v2 = vadd.f32 %v4638_v21, %v4702_v25 }
 0x2db   : > { %v4640_v11 = vpop.f32.mrf.mxu0 }
 0x2dc   : > { %v2231_v19 = vadd.f32 %v4640_v11, %v4705_v48 }
 0x2dd   : > { %v4642_v1 = vpop.f32.mrf.mxu0 }
 0x2df   : > { %v4644_v0 = vpop.f32.mrf.mxu0 }
 0x2e1   : > { %v4646_v36 = vpop.f32.mrf.mxu0 }
 0x2e2   : > { %v2239_v11 = vadd.f32 %v4646_v36, %v4702_v25 }
 0x2e3   : > { %v4648_v24 = vpop.f32.mrf.mxu0 }
 0x2e5   : > { %v4650_v63 = vpop.f32.mrf.mxu0 }
 0x2e7   : > { %v4652_v62 = vpop.f32.mrf.mxu0 }
 0x2e9   : > { %v4654_v60 = vpop.f32.mrf.mxu0 }
 0x2eb   : > { %v4656_v39 = vpop.f32.mrf.mxu0 }
 0x2ed   : > { %v4658_v5 = vpop.f32.mrf.mxu0 }
 0x2ef   : > { %v4660_v16 = vpop.f32.mrf.mxu0 }
 0x2f1   : > { %v4662_v51 = vpop.f32.mrf.mxu0 }
 0x2f3   : > { %v4664_v20 = vpop.f32.mrf.mxu0 }
 0x2f5   : > { %v4666_v57 = vpop.f32.mrf.mxu0 }
 0x2f7   : > { %v4668_v52 = vpop.f32.mrf.mxu0 }
 0x2f9   : > { %v4670_v18 = vpop.f32.mrf.mxu0 }
 0x2fb   : > { %v4672_v45 = vpop.f32.mrf.mxu0 }
 0x2fd   : > { %v4674_v46 = vpop.f32.mrf.mxu0 }
 0x2ff   : > { %v4676_v55 = vpop.f32.mrf.mxu0 }
 0x301   : > { %v4678_v37 = vpop.f32.mrf.mxu0 }
 0x303   : > { %v4680_v7 = vpop.f32.mrf.mxu0 }
 0x305   : > { %v4682_v56 = vpop.f32.mrf.mxu0 }
 0x307   : > { %v4684_v44 = vpop.f32.mrf.mxu0 }
 0x309   : > { %v4686_v41 = vpop.f32.mrf.mxu0 }
 0x30b   : > { %v4688_v50 = vpop.f32.mrf.mxu0 }
 0x30d   : > { %v4690_v42 = vpop.f32.mrf.mxu0 }
 0x30f   : > { %v4692_v23 = vpop.f32.mrf.mxu0 }
 0x311   : > { %v4694_v28 = vpop.f32.mrf.mxu0 }
 0x313   : > { %v4699_v47 = vpop.f32.mrf.mxu0 }
 0x315   : > { %v2302_v3 = vpop.f32.mrf.mxu0 }
 0x317   : > { %v2303_v53 = vpop.f32.mrf.mxu0 }
 0x318   : > { %v2339_v33 = vpop.f32.mrf.mxu1 }
 0x319   : > { %v2340_v22 = vadd.f32 %v2339_v33, %v2209_v14 }
 0x31a   : > { %v2341_v32 = vpop.f32.mrf.mxu1 }
 0x31b   : > { %v2342_v58 = vadd.f32 %v2341_v32, %v2211_v29  ;;  %v2436_v9 = vmax.f32 %v2340_v22, 0.0 }
 0x31c   : > { %v2343_v31 = vpop.f32.mrf.mxu1 }
 0x31d   : > { %v2344_v15 = vadd.f32 %v2343_v31, %v2213_v49  ;;  %v2437_v6 = vmax.f32 %v2342_v58, 0.0 }
 0x31e   : > { %v2345_v54 = vpop.f32.mrf.mxu1 }
 0x31f   : > { %v2438_v26 = vmax.f32 %v2344_v15, 0.0  ;;  %v2346_v17 = vadd.f32 %v2345_v54, %v2215_v38  ;;  %v2233_v38 = vadd.f32 %v4642_v1, %v4702_v25 }
 0x320   : > { %v2349_v27 = vpop.f32.mrf.mxu1 }
 0x321   : > { %v2474_v35 = vpack.c.bf16 %v2438_v26, %v2436_v9  ;;  %v2439_v13 = vmax.f32 %v2346_v17, 0.0  ;;  %v2350_v40 = vadd.f32 %v2349_v27, %v2219_v30  ;;  %v2235_v9 = vadd.f32 %v4644_v0, %v4705_v48 }
 0x322   : > { %v2351_v34 = vpop.f32.mrf.mxu1  ;;  %v2241_v0 = vadd.f32 %v4648_v24, %v4705_v48  ;;  %v2249_v24 = vadd.f32 %v4654_v60, %v4702_v25 }
 0x323   : > { %v2475_v10 = vpack.c.bf16 %v2439_v13, %v2437_v6  ;;  %v2352_v3 = vadd.f32 %v2351_v34, %v2221_v59  ;;  %v2440_v8 = vmax.f32 %v2350_v40, 0.0 }
 0x324   : > { %v2353_v4 = vpop.f32.mrf.mxu1 }
 0x325   : > { %v2354_v53 = vadd.f32 %v2353_v4, %v2223_v43  ;;  %3022 = vmatprep.mubr.msk.bf16.mxu0 %vm2143_vm2, %v2475_v10  ;;  %v2441_v49 = vmax.f32 %v2352_v3, 0.0  ;;  %v2243_v43 = vadd.f32 %v4650_v63, %v4702_v25 }
 0x326   : > { %v2355_v33 = vpop.f32.mrf.mxu1  ;;  %2644 = vmatmul.mubr.bf16.vlgmr.msra.gmra.mxu0 %v2474_v35 }
 0x327   : > { %v2442_v14 = vmax.f32 %v2354_v53, 0.0  ;;  %v2356_v32 = vadd.f32 %v2355_v33, %v2225_v12  ;;  %v2245_v12 = vadd.f32 %v4652_v62, %v4705_v48  ;;  %v2251_v62 = vadd.f32 %v4656_v39, %v4705_v48 }
 0x328   : > { %v2359_v29 = vpop.f32.mrf.mxu1  ;;  %v2259_v39 = vadd.f32 %v4662_v51, %v4702_v25 }
 0x329   : > { %v2476_v61 = vpack.c.bf16 %v2442_v14, %v2440_v8  ;;  %v2443_v22 = vmax.f32 %v2356_v32, 0.0  ;;  %v2360_v15 = vadd.f32 %v2359_v29, %v2229_v2 }
 0x32a   : > { %v2361_v31 = vpop.f32.mrf.mxu1 }
 0x32b   : > { %v2477_v58 = vpack.c.bf16 %v2443_v22, %v2441_v49  ;;  %v2362_v26 = vadd.f32 %v2361_v31, %v2231_v19  ;;  %v2444_v27 = vmax.f32 %v2360_v15, 0.0 }
 0x32c   : > { %v2363_v54 = vpop.f32.mrf.mxu1 }
 0x32d   : > { %v2364_v17 = vadd.f32 %v2363_v54, %v2233_v38  ;;  %3023 = vmatprep.mubr.msk.bf16.mxu0 %vm2143_vm2, %v2477_v58  ;;  %v2445_v1 = vmax.f32 %v2362_v26, 0.0  ;;  %v2255_v38 = vadd.f32 %v4660_v16, %v4705_v48  ;;  %v2261_v16 = vadd.f32 %v4664_v20, %v4705_v48 }
 0x32e   : > { %v2365_v21 = vpop.f32.mrf.mxu1  ;;  %2652 = vmatmul.mubr.bf16.gmra.mxu0 %v2476_v61  ;;  %v2253_v61 = vadd.f32 %v4658_v5, %v4702_v25  ;;  %v2269_v20 = vadd.f32 %v4670_v18, %v4702_v25 }
 0x32f   : > { %v2446_v30 = vmax.f32 %v2364_v17, 0.0  ;;  %v2366_v6 = vadd.f32 %v2365_v21, %v2235_v9 }
 0x330   : > { %v2369_v35 = vpop.f32.mrf.mxu1 }
 0x331   : > { %v2478_v13 = vpack.c.bf16 %v2446_v30, %v2444_v27  ;;  %v2447_v34 = vmax.f32 %v2366_v6, 0.0  ;;  %v2370_v40 = vadd.f32 %v2369_v35, %v2239_v11  ;;  %v2263_v6 = vadd.f32 %v4666_v57, %v4702_v25 }
 0x332   : > { %v2371_v59 = vpop.f32.mrf.mxu1 }
 0x333   : > { %v2479_v10 = vpack.c.bf16 %v2447_v34, %v2445_v1  ;;  %v2372_v3 = vadd.f32 %v2371_v59, %v2241_v0  ;;  %v2448_v33 = vmax.f32 %v2370_v40, 0.0 }
 0x334   : > { %v2373_v4 = vpop.f32.mrf.mxu1 }
 0x335   : > { %v2374_v53 = vadd.f32 %v2373_v4, %v2243_v43  ;;  %3024 = vmatprep.mubr.msk.bf16.mxu0 %vm2143_vm2, %v2479_v10  ;;  %v2449_v63 = vmax.f32 %v2372_v3, 0.0 }
 0x336   : > { %v2375_v36 = vpop.f32.mrf.mxu1  ;;  %2660 = vmatmul.mubr.bf16.gmra.mxu0 %v2478_v13  ;;  %v2265_v13 = vadd.f32 %v4668_v52, %v4705_v48  ;;  %v2271_v52 = vadd.f32 %v4672_v45, %v4705_v48  ;;  %v2279_v45 = vadd.f32 %v4678_v37, %v4702_v25 }
 0x337   : > { %v2450_v8 = vmax.f32 %v2374_v53, 0.0  ;;  %v2376_v14 = vadd.f32 %v2375_v36, %v2245_v12  ;;  %v2273_v53 = vadd.f32 %v4674_v46, %v4702_v25 }
 0x338   : > { %v2379_v32 = vpop.f32.mrf.mxu1 }
 0x339   : > { %v2480_v29 = vpack.c.bf16 %v2450_v8, %v2448_v33  ;;  %v2451_v2 = vmax.f32 %v2376_v14, 0.0  ;;  %v2380_v31 = vadd.f32 %v2379_v32, %v2249_v24  ;;  %v2275_v14 = vadd.f32 %v4676_v55, %v4705_v48 }
 0x33a   : > { %v2381_v49 = vpop.f32.mrf.mxu1  ;;  %v2281_v55 = vadd.f32 %v4680_v7, %v4705_v48  ;;  %v2289_v7 = vadd.f32 %v4686_v41, %v4702_v25 }
 0x33b   : > { %v2481_v22 = vpack.c.bf16 %v2451_v2, %v2449_v63  ;;  %v2382_v58 = vadd.f32 %v2381_v49, %v2251_v62  ;;  %v2452_v54 = vmax.f32 %v2380_v31, 0.0  ;;  %v2283_v31 = vadd.f32 %v4682_v56, %v4702_v25 }
 0x33c   : > { %v2383_v19 = vpop.f32.mrf.mxu1 }
 0x33d   : > { %v2384_v15 = vadd.f32 %v2383_v19, %v2253_v61  ;;  %3025 = vmatprep.mubr.msk.bf16.mxu0 %vm2143_vm2, %v2481_v22  ;;  %v2453_v5 = vmax.f32 %v2382_v58, 0.0 }
 0x33e   : > { %v2385_v60 = vpop.f32.mrf.mxu1  ;;  %2668 = vmatmul.mubr.bf16.gmra.mxu0 %v2480_v29 }
 0x33f   : > { %v2454_v9 = vmax.f32 %v2384_v15, 0.0  ;;  %v2386_v26 = vadd.f32 %v2385_v60, %v2255_v38  ;;  %v2285_v15 = vadd.f32 %v4684_v44, %v4705_v48  ;;  %v2291_v44 = vadd.f32 %v4688_v50, %v4705_v48 }
 0x340   : > { %v2389_v17 = vpop.f32.mrf.mxu1  ;;  %v2301_v50 = vadd.f32 %v4699_v47, %v4705_v48 }
 0x341   : > { %v2482_v21 = vpack.c.bf16 %v2454_v9, %v2452_v54  ;;  %v2455_v27 = vmax.f32 %v2386_v26, 0.0  ;;  %v2390_v11 = vadd.f32 %v2389_v17, %v2259_v39 }
 0x342   : > { %v2391_v30 = vpop.f32.mrf.mxu1 }
 0x343   : > { %v2483_v35 = vpack.c.bf16 %v2455_v27, %v2453_v5  ;;  %v2392_v34 = vadd.f32 %v2391_v30, %v2261_v16  ;;  %v2456_v0 = vmax.f32 %v2390_v11, 0.0  ;;  %v2293_v30 = vadd.f32 %v4690_v42, %v4702_v25 }
 0x344   : > { %v2393_v1 = vpop.f32.mrf.mxu1  ;;  %v2295_v11 = vadd.f32 %v4692_v23, %v4705_v48  ;;  %v2299_v23 = vadd.f32 %v4694_v28, %v4702_v25  ;;  %v4791_v28 = vld [vmem:[%s4892_s8] ss:$0 sm:$0xff] }
 0x345   : > { %v2394_v59 = vadd.f32 %v2393_v1, %v2263_v6  ;;  %3026 = vmatprep.mubr.msk.bf16.mxu0 %vm2143_vm2, %v2483_v35  ;;  %v2457_v57 = vmax.f32 %v2392_v34, 0.0 }
 0x346   : > { %v2395_v51 = vpop.f32.mrf.mxu1  ;;  %2676 = vmatmul.mubr.bf16.gmra.mxu0 %v2482_v21 }
 0x347   : > { %v2458_v43 = vmax.f32 %v2394_v59, 0.0  ;;  %v2396_v10 = vadd.f32 %v2395_v51, %v2265_v13 }
 0x348   : > { %v2399_v40 = vpop.f32.mrf.mxu1 }
 0x349   : > { %v2484_v4 = vpack.c.bf16 %v2458_v43, %v2456_v0  ;;  %v2459_v12 = vmax.f32 %v2396_v10, 0.0  ;;  %v2400_v33 = vadd.f32 %v2399_v40, %v2269_v20 }
 0x34a   : > { %v2401_v3 = vpop.f32.mrf.mxu1 }
 0x34b   : > { %v2485_v36 = vpack.c.bf16 %v2459_v12, %v2457_v57  ;;  %v2402_v32 = vadd.f32 %v2401_v3, %v2271_v52  ;;  %v2460_v63 = vmax.f32 %v2400_v33, 0.0 }
 0x34c   : > { %v2403_v8 = vpop.f32.mrf.mxu1 }
 0x34d   : > { %v2404_v24 = vadd.f32 %v2403_v8, %v2273_v53  ;;  %3027 = vmatprep.mubr.msk.bf16.mxu0 %vm2143_vm2, %v2485_v36  ;;  %v2461_v46 = vmax.f32 %v2402_v32, 0.0 }
 0x34e   : > { %v2405_v18 = vpop.f32.mrf.mxu1  ;;  %2684 = vmatmul.mubr.bf16.gmra.mxu0 %v2484_v4 }
 0x34f   : > { %v2462_v29 = vmax.f32 %v2404_v24, 0.0  ;;  %v2406_v2 = vadd.f32 %v2405_v18, %v2275_v14 }
 0x350   : > { %v2409_v49 = vpop.f32.mrf.mxu1 }
 0x351   : > { %v2486_v62 = vpack.c.bf16 %v2462_v29, %v2460_v63  ;;  %v2463_v61 = vmax.f32 %v2406_v2, 0.0  ;;  %v2410_v38 = vadd.f32 %v2409_v49, %v2279_v45 }
 0x352   : > { %v2411_v22 = vpop.f32.mrf.mxu1 }
 0x353   : > { %v2487_v19 = vpack.c.bf16 %v2463_v61, %v2461_v46  ;;  %v2412_v60 = vadd.f32 %v2411_v22, %v2281_v55  ;;  %v2464_v9 = vmax.f32 %v2410_v38, 0.0 }
 0x354   : > { %v2413_v58 = vpop.f32.mrf.mxu1 }
 0x355   : > { %v2414_v54 = vadd.f32 %v2413_v58, %v2283_v31  ;;  %3028 = vmatprep.mubr.msk.bf16.mxu0 %vm2143_vm2, %v2487_v19  ;;  %v2465_v56 = vmax.f32 %v2412_v60, 0.0 }
 0x356   : > { %v2415_v37 = vpop.f32.mrf.mxu1  ;;  %2692 = vmatmul.mubr.bf16.gmra.mxu0 %v2486_v62 }
 0x357   : > { %v2466_v26 = vmax.f32 %v2414_v54, 0.0  ;;  %v2416_v17 = vadd.f32 %v2415_v37, %v2285_v15 }
 0x358   : > { %v2419_v39 = vpop.f32.mrf.mxu1 }
 0x359   : > { %v2488_v5 = vpack.c.bf16 %v2466_v26, %v2464_v9  ;;  %v2467_v21 = vmax.f32 %v2416_v17, 0.0  ;;  %v2420_v6 = vadd.f32 %v2419_v39, %v2289_v7 }
 0x35a   : > { %v2421_v27 = vpop.f32.mrf.mxu1 }
 0x35b   : > { %v2489_v16 = vpack.c.bf16 %v2467_v21, %v2465_v56  ;;  %v2422_v1 = vadd.f32 %v2421_v27, %v2291_v44  ;;  %v2468_v34 = vmax.f32 %v2420_v6, 0.0 }
 0x35c   : > { %v2423_v35 = vpop.f32.mrf.mxu1 }
 0x35d   : > { %v2424_v13 = vadd.f32 %v2423_v35, %v2293_v30  ;;  %3029 = vmatprep.mubr.msk.bf16.mxu0 %vm2143_vm2, %v2489_v16  ;;  %v2469_v42 = vmax.f32 %v2422_v1, 0.0 }
 0x35e   : > { %v2425_v41 = vpop.f32.mrf.mxu1  ;;  %2700 = vmatmul.mubr.bf16.gmra.mxu0 %v2488_v5 }
 0x35f   : > { %v2470_v59 = vmax.f32 %v2424_v13, 0.0  ;;  %v2426_v51 = vadd.f32 %v2425_v41, %v2295_v11 }
 0x360   : > { %v2429_v0 = vpop.f32.mrf.mxu1 }
 0x361   : > { %v2490_v43 = vpack.c.bf16 %v2470_v59, %v2468_v34  ;;  %v2471_v10 = vmax.f32 %v2426_v51, 0.0  ;;  %v2430_v4 = vadd.f32 %v2429_v0, %v2299_v23 }
 0x362   : > { %v2431_v40 = vpop.f32.mrf.mxu1 }
 0x363   : > { %v2491_v20 = vpack.c.bf16 %v2471_v10, %v2469_v42  ;;  %v2432_v57 = vadd.f32 %v2431_v40, %v2301_v50  ;;  %v2472_v47 = vmax.f32 %v2430_v4, 0.0 }
 0x364   : > { %v2433_v12 = vpop.f32.mrf.mxu1 }
 0x365   : > { %v2473_v3 = vmax.f32 %v2432_v57, 0.0  ;;  %3030 = vmatprep.mubr.msk.bf16.mxu0 %vm2143_vm2, %v2491_v20  ;;  %v2492_v48 = vpack.c.bf16 %v2472_v47, %v2472_v47 }
 0x366   : > { %v2434_v52 = vpop.f32.mrf.mxu1  ;;  %2708 = vmatmul.mubr.bf16.gmra.mxu0 %v2490_v43 }
 0x367   : > { %v2493_v53 = vpack.c.bf16 %v2473_v3, %v2473_v3 }
 0x369   : > { %3031 = vmatprep.mubr.msk.bf16.mxu0 %vm2143_vm2, %v2493_v53 }
 0x36e   : > { %2716 = vmatmul.mubr.bf16.gmra.mxu0 %v2492_v48 }
 0x3e6   : > { %v2645_v25 = vpop.f32.mrf.mxu0 }
 0x3e7   : > { %v2646_v36 = vadd.f32 %v4791_v28, %v2645_v25 }
 0x3e8   : > { %v2647_v33 = vpop.f32.mrf.mxu0 }
 0x3e9   : > { %v2723_v8 = vmax.f32 %v2646_v36, 0.0 }
 0x3ea   : > { %v2648_v14 = vpop.f32.mrf.mxu0 }
 0x3eb   : > { %2742 = vst [vmem:[%s4794_s24] sm:$0xff] %v2723_v8  ;;  %v2649_v32 = vadd.f32 %v4791_v28, %v2648_v14 }
 0x3ec   : > { %v2650_v24 = vpop.f32.mrf.mxu0 }
 0x3ed   : > { %v2724_v18 = vmax.f32 %v2649_v32, 0.0 }
 0x3ee   : > { %v2653_v63 = vpop.f32.mrf.mxu0 }
 0x3ef   : > { %2743 = vst [vmem:[%s4794_s24 + $0x8] sm:$0xff] %v2724_v18  ;;  %v2654_v29 = vadd.f32 %v4791_v28, %v2653_v63 }
 0x3f0   : > { %v2655_v2 = vpop.f32.mrf.mxu0 }
 0x3f1   : > { %v2725_v49 = vmax.f32 %v2654_v29, 0.0 }
 0x3f2   : > { %v2656_v45 = vpop.f32.mrf.mxu0 }
 0x3f3   : > { %2744 = vst [vmem:[%s4794_s24 + $0x10] sm:$0xff] %v2725_v49  ;;  %v2657_v46 = vadd.f32 %v4791_v28, %v2656_v45 }
 0x3f4   : > { %v2658_v62 = vpop.f32.mrf.mxu0 }
 0x3f5   : > { %v2726_v61 = vmax.f32 %v2657_v46, 0.0 }
 0x3f6   : > { %v2661_v22 = vpop.f32.mrf.mxu0 }
 0x3f7   : > { %2745 = vst [vmem:[%s4794_s24 + $0x18] sm:$0xff] %v2726_v61  ;;  %v2662_v55 = vadd.f32 %v4791_v28, %v2661_v22 }
 0x3f8   : > { %v2663_v31 = vpop.f32.mrf.mxu0 }
 0x3f9   : > { %v2727_v19 = vmax.f32 %v2662_v55, 0.0 }
 0x3fa   : > { %v2664_v38 = vpop.f32.mrf.mxu0 }
 0x3fb   : > { %2746 = vst [vmem:[%s4794_s24 + $0x20] sm:$0xff] %v2727_v19  ;;  %v2665_v58 = vadd.f32 %v4791_v28, %v2664_v38 }
 0x3fc   : > { %v2666_v15 = vpop.f32.mrf.mxu0 }
 0x3fd   : > { %v2728_v60 = vmax.f32 %v2665_v58, 0.0 }
 0x3fe   : > { %v2669_v54 = vpop.f32.mrf.mxu0 }
 0x3ff   : > { %2747 = vst [vmem:[%s4794_s24 + $0x28] sm:$0xff] %v2728_v60  ;;  %v2670_v37 = vadd.f32 %v4791_v28, %v2669_v54 }
 0x400   : > { %v2671_v9 = vpop.f32.mrf.mxu0 }
 0x401   : > { %v2729_v26 = vmax.f32 %v2670_v37, 0.0 }
 0x402   : > { %v2672_v17 = vpop.f32.mrf.mxu0 }
 0x403   : > { %2748 = vst [vmem:[%s4794_s24 + $0x30] sm:$0xff] %v2729_v26  ;;  %v2673_v39 = vadd.f32 %v4791_v28, %v2672_v17 }
 0x404   : > { %v2674_v7 = vpop.f32.mrf.mxu0 }
 0x405   : > { %v2730_v56 = vmax.f32 %v2673_v39, 0.0 }
 0x406   : > { %v2677_v5 = vpop.f32.mrf.mxu0 }
 0x407   : > { %2749 = vst [vmem:[%s4794_s24 + $0x38] sm:$0xff] %v2730_v56  ;;  %v2678_v21 = vadd.f32 %v4791_v28, %v2677_v5 }
 0x408   : > { %v2679_v27 = vpop.f32.mrf.mxu0 }
 0x409   : > { %v2731_v44 = vmax.f32 %v2678_v21, 0.0 }
 0x40a   : > { %v2680_v30 = vpop.f32.mrf.mxu0 }
 0x40b   : > { %2750 = vst [vmem:[%s4794_s24 + $0x40] sm:$0xff] %v2731_v44  ;;  %v2681_v16 = vadd.f32 %v4791_v28, %v2680_v30 }
 0x40c   : > { %v2682_v6 = vpop.f32.mrf.mxu0 }
 0x40d   : > { %v2732_v35 = vmax.f32 %v2681_v16, 0.0 }
 0x40e   : > { %v2685_v11 = vpop.f32.mrf.mxu0 }
 0x40f   : > { %2751 = vst [vmem:[%s4794_s24 + $0x48] sm:$0xff] %v2732_v35  ;;  %v2686_v1 = vadd.f32 %v4791_v28, %v2685_v11 }
 0x410   : > { %v2687_v13 = vpop.f32.mrf.mxu0 }
 0x411   : > { %v2733_v41 = vmax.f32 %v2686_v1, 0.0 }
 0x412   : > { %v2688_v34 = vpop.f32.mrf.mxu0 }
 0x413   : > { %2752 = vst [vmem:[%s4794_s24 + $0x50] sm:$0xff] %v2733_v41  ;;  %v2689_v59 = vadd.f32 %v4791_v28, %v2688_v34 }
 0x414   : > { %v2690_v51 = vpop.f32.mrf.mxu0 }
 0x415   : > { %v2734_v0 = vmax.f32 %v2689_v59, 0.0 }
 0x416   : > { %v2693_v50 = vpop.f32.mrf.mxu0 }
 0x417   : > { %2753 = vst [vmem:[%s4794_s24 + $0x58] sm:$0xff] %v2734_v0  ;;  %v2694_v42 = vadd.f32 %v4791_v28, %v2693_v50 }
 0x418   : > { %v2695_v43 = vpop.f32.mrf.mxu0 }
 0x419   : > { %v2735_v10 = vmax.f32 %v2694_v42, 0.0 }
 0x41a   : > { %v2696_v23 = vpop.f32.mrf.mxu0 }
 0x41b   : > { %2754 = vst [vmem:[%s4794_s24 + $0x60] sm:$0xff] %v2735_v10  ;;  %v2697_v40 = vadd.f32 %v4791_v28, %v2696_v23 }
 0x41c   : > { %v2698_v20 = vpop.f32.mrf.mxu0 }
 0x41d   : > { %v2736_v57 = vmax.f32 %v2697_v40, 0.0 }
 0x41e   : > { %v2701_v4 = vpop.f32.mrf.mxu0 }
 0x41f   : > { %2755 = vst [vmem:[%s4794_s24 + $0x68] sm:$0xff] %v2736_v57  ;;  %v2702_v12 = vadd.f32 %v4791_v28, %v2701_v4 }
 0x420   : > { %v2703_v3 = vpop.f32.mrf.mxu0 }
 0x421   : > { %v2737_v52 = vmax.f32 %v2702_v12, 0.0 }
 0x422   : > { %v2704_v53 = vpop.f32.mrf.mxu0 }
 0x423   : > { %2756 = vst [vmem:[%s4794_s24 + $0x70] sm:$0xff] %v2737_v52  ;;  %v2705_v47 = vadd.f32 %v4791_v28, %v2704_v53 }
 0x424   : > { %v2706_v48 = vpop.f32.mrf.mxu0 }
 0x425   : > { %v2738_v25 = vmax.f32 %v2705_v47, 0.0 }
 0x426   : > { %v2709_v36 = vpop.f32.mrf.mxu0 }
 0x427   : > { %2757 = vst [vmem:[%s4794_s24 + $0x78] sm:$0xff] %v2738_v25  ;;  %v2710_v33 = vadd.f32 %v4791_v28, %v2709_v36 }
 0x428   : > { %v2711_v8 = vpop.f32.mrf.mxu0 }
 0x429   : > { %v2739_v14 = vmax.f32 %v2710_v33, 0.0 }
 0x42a   : > { %v2712_v32 = vpop.f32.mrf.mxu0 }
 0x42b   : > { %2758 = vst [vmem:[%s4794_s24 + $0x80] sm:$0xff] %v2739_v14  ;;  %v2713_v24 = vadd.f32 %v4791_v28, %v2712_v32 }
 0x42c   : > { %v2714_v18 = vpop.f32.mrf.mxu0 }
 0x42d   : > { %v2740_v63 = vmax.f32 %v2713_v24, 0.0 }
 0x42e   : > { %v2717_v29 = vpop.f32.mrf.mxu0 }
 0x42f   : > { %2759 = vst [vmem:[%s4794_s24 + $0x88] sm:$0xff] %v2740_v63  ;;  %v2718_v2 = vadd.f32 %v4791_v28, %v2717_v29 }
 0x430   : > { %v2719_v49 = vpop.f32.mrf.mxu0 }
 0x431   : > { %v2741_v45 = vmax.f32 %v2718_v2, 0.0 }
 0x432   : > { %v2720_v46 = vpop.f32.mrf.mxu0 }
 0x433   : > { %2760 = vst [vmem:[%s4794_s24 + $0x90] sm:$0xff] %v2741_v45 }
 0x434   : > { %v2721_v62 = vpop.f32.mrf.mxu0 }
 0x435   : > { %3491 = shalt.err (!%p3488_p0)
}
 0x436   : > { %s3492_s16 = scalar_lea.hbm %s4837_s26, 2432  ;;  %s3496_s22 = scalar_lea.hbm %s4893_s9, 4864 }
 0x437   : > { %p3493_p1 = scmp.ne.s32.totalorder %s4837_s26, %s3492_s16  ;;  %p3497_p4 = scmp.lt.s32.totalorder %s4837_s26, %s4893_s9 }
 0x438   : > { %p3498_p7 = scmp.lt.s32.totalorder %s3496_s22, %s3492_s16 }
 0x439   : > { %p3494_p2 = pnand %p3493_p1, %p3639_p5 }
 0x43a   : > { %p3499_p6 = por %p3498_p7, %p3497_p4 }
 0x43b   : > { %p3495_p3 = pneg %p3494_p2 }
 0x43d   : > { %p3500_p8 = pnand %p3499_p6, %p3495_p3 }
 0x43f   : > { %3503 = shalt.err (!%p3500_p8)
}
 0x440   : > { %s3549_s27 = smov 128   ;;  %s3550_s14 = smov 8  }
 0x441   : > { %3224 = dma.vmem_to_hbm [thread:$0]  (%p3639_p5), %s4839_s23, 2432, %s4837_s26, %s4844_s13, %s3549_s27, %s3549_s27, %s3550_s14  }
 0x442 PF: > { %p3236_p9 = scmp.ge.s32.totalorder %s3542_s12, 2  ;;  %s2790_s28 = sand.u32 1, %s3530_s30  }
 0x443   : > { %p4897_p10 = scmp.ne.s32.totalorder %s4895_s20, 0  ;;  %s2791_s17 = scalar_lea.sflag [#allocation4], %s2790_s28 }
 0x445   : > { %p3231_p11 = pnand %p3236_p9, %p4897_p10 }
 0x447   : > { %p3232_p12 = pneg %p3231_p11 }
 0x449   : > { %3525 = dma.done.wait (%p3232_p12), %s2791_s17, 2432  }
 0x44a   : > { %3527 = vsyncadd (%p3232_p12), %s2791_s17, 4294964864  ;;  %p20_p13 = scmp.ge.s32.totalorder %s3626_s15, 4   ;;  %s4898_s30 = smov %s3534_s10 }
 0x44b   : > { %s4899_s10 = smov %s3538_s11  ;;  %s4900_s11 = smov %s3637_s18 }
 0x44c   : > { %s4901_s12 = smov %s3626_s15  ;;  %22 = sbr.rel (!%p20_p13) target bundleno = 4 (0x4), region = 96 }
 0x451   :  { %2796 = vsyncpa [#allocation3], 1 }
 0x452   :  { %2798 = vsyncpa [#allocation3 + $0x1], 1 }
 0x453   :  { %2799 = vsyncpa [#allocation4], 1 }
 0x454   :  { %2801 = vsyncpa [#allocation4 + $0x1], 1 }

</bundles_post_ra>
